<compile_context>
chip_gen: v7x
topology: tpu7x:2x2x1
jax: 0.10.0
libtpu: 0.0.40
codegen_flags: <defaults>
</compile_context>

<pallas_src>
from functools import partial

import jax
import jax.numpy as jnp
from jax.experimental import pallas as pl
from jax.experimental.pallas import tpu as pltpu

F32 = jnp.float32
BF16 = jnp.bfloat16
LANE = 128          # lane-dense padded output width
BIG = 1e30          # finite sentinel (avoids -inf/NaN propagation)
VMEM_SPEC = pl.BlockSpec(memory_space=pltpu.MemorySpace.VMEM)


# ---------------------------------------------------------------- fused Pallas kernel

def _build_fused_kernel(ratio):
    """Returns the fused forward kernel. `ratio` (SAGPool keep ratio) is static."""

    def kernel(a_ref, x_ref, mbn_ref, mnb_ref,
               w1_ref, w2_ref, w3_ref, cb_ref, pw_ref, pb_ref,
               l1_ref, l2_ref, l3_ref, out_ref):
        n = a_ref.shape[0]                    # total nodes
        b = mbn_ref.shape[0]                  # graphs in batch
        nh = w2_ref.shape[1]                  # hidden width
        npg = n // b                          # nodes per graph (contiguous, equal-sized)

        a_b = a_ref[...]                      # (N, N) bf16, A[dst, src] in {0,1}
        memb_bn = mbn_ref[...]                # (B, N) graph membership (one-hot)
        memb_nb = mnb_ref[...]                # (N, B)

        # Hoisted helpers (shared by all 3 layers).
        row_idx = jax.lax.broadcasted_iota(jnp.int32, (n, n), 0)   # i
        col_idx = jax.lax.broadcasted_iota(jnp.int32, (n, n), 1)   # j
        eye_b = (row_idx == col_idx).astype(BF16)                  # (N, N) diag mask
        ones_row_b = jnp.ones((1, n), BF16)
        ones_col = jnp.ones((n, 1), F32)
        same = jnp.dot(memb_nb, memb_bn, preferred_element_type=F32)   # (N,N) same-graph

        h = x_ref[...]                        # (N, F) node features (f32)
        active = jnp.ones((n, 1), F32)        # selected-node mask of current graph
        readout_sum = jnp.zeros((b, 2 * nh), F32)
        conv_w_refs = (w1_ref, w2_ref, w3_ref)

        for i in range(3):
            # --- GraphConv + ReLU (fused root/rel matmul). h is zero on inactive nodes,
            #     so the unmasked A@h equals aggregation over the pooled subgraph.
            h_b16 = h.astype(BF16)
            agg = jnp.dot(a_b, h_b16, preferred_element_type=F32)        # (N, in)
            hcat = jnp.concatenate([h, agg], axis=1)                     # (N, 2*in)
            cb = cb_ref[i:i + 1, :]                                      # (1, H)
            h = jnp.maximum(
                jnp.dot(hcat, conv_w_refs[i][...], preferred_element_type=F32) + cb, 0.0)

            # --- SAGPool GCN score on the masked graph:
            #     score = D^-1/2 (A_mask + I_act) D^-1/2 h w^T + b
            deg = active * (jnp.dot(a_b, active.astype(BF16),
                                    preferred_element_type=F32) + 1.0)   # (N,1) exact
            dinv = jnp.where(deg > 0.0, jax.lax.rsqrt(deg), 0.0)
            hz = dinv * h                                                # zero if inactive
            prop = jnp.dot(a_b, hz.astype(BF16),
                           preferred_element_type=F32) + hz              # (N, H)
            pw = pw_ref[:, i:i + 1]                                      # (H, 1)
            pb = pb_ref[i:i + 1, :]                                      # (1, 1)
            score = dinv * jnp.dot(prop, pw, preferred_element_type=F32) + pb   # (N, 1)

            # --- per-graph top-k: k = ceil(ratio * n_active), rank by score
            #     (lowest-index tie-break). Row/column views of the score use identical
            #     bf16 rounding so the pairwise comparison is internally consistent.
            neg = jnp.where(active > 0.0, score, -BIG)                   # (N, 1)
            neg_b16 = neg.astype(BF16)
            neg_row = jnp.dot(ones_row_b, eye_b * neg_b16,
                              preferred_element_type=F32)                # (1, N) on MXU
            neg_cmp = neg_b16.astype(F32)                                # (N, 1) same vals
            better = ((neg_row > neg_cmp)
                      | ((neg_row == neg_cmp) & (col_idx < row_idx))).astype(F32)
            rank = jnp.dot(same * better, ones_col,
                           preferred_element_type=F32)                   # (N,1) exact ints
            n_act = jnp.dot(memb_bn, active, preferred_element_type=F32)  # (B, 1)
            k_node = jnp.dot(memb_nb, jnp.ceil(ratio * n_act),
                             preferred_element_type=F32)                 # (N, 1)
            sel = ((active > 0.0) & (rank < k_node)).astype(F32)          # (N, 1)

            # --- pool scaling + readout [global max | global mean] over selected nodes
            h = h * jnp.tanh(score) * sel                                 # x[perm]*tanh(s)
            counts = jnp.dot(memb_bn, sel, preferred_element_type=F32)    # (B, 1)
            gap = (jnp.dot(memb_bn, h, preferred_element_type=F32)
                   / jnp.maximum(counts, 1.0))                            # (B, H)
            h_masked = jnp.where(sel > 0.0, h, -BIG)                      # (N, H)
            gmp = jnp.max(h_masked.reshape(b, npg, nh), axis=1)           # (B, H)
            gmp = jnp.where(counts > 0.0, gmp, 0.0)                       # empty-graph guard
            readout_sum = readout_sum + jnp.concatenate([gmp, gap], axis=1)

            active = sel

        # --- MLP head (lin3 weights/bias lane-padded to 128 by the wrapper)
        # TODO(synk): F.dropout(p=0.5) omitted — eval-mode identity.
        w1 = l1_ref[:2 * nh, :]
        b1 = l1_ref[2 * nh:2 * nh + 1, :]
        z = jnp.maximum(jnp.dot(readout_sum, w1, preferred_element_type=F32) + b1, 0.0)
        nh2 = l2_ref.shape[1]
        w2 = l2_ref[:nh, :]
        b2 = l2_ref[nh:nh + 1, :]
        z = jnp.maximum(jnp.dot(z, w2, preferred_element_type=F32) + b2, 0.0)
        w3 = l3_ref[:nh2, :]
        b3 = l3_ref[nh2:nh2 + 1, :]
        logits = jnp.dot(z, w3, preferred_element_type=F32) + b3          # (B, 128)
        m = jnp.max(logits, axis=-1, keepdims=True)
        zc = logits - m
        out_ref[...] = zc - jnp.log(jnp.sum(jnp.exp(zc), axis=-1, keepdims=True))

    return kernel


# ---------------------------------------------------------------- wrapper

@partial(jax.jit, static_argnums=(4, 5))
def net_forward(params, x, a, batch, num_graphs, ratio):
    n, num_features = x.shape
    nhid = params["conv2"]["w_root"].shape[0]
    num_classes = params["lin"]["w3"].shape[1]
    # Layout contract for the reshape-based per-graph max: graphs are contiguous and
    # equal-sized (pad each graph to the same node count if necessary).
    assert n % num_graphs == 0, "graphs must be contiguous and equal-sized"

    onehot = (batch[None, :] == jnp.arange(num_graphs, dtype=batch.dtype)[:, None]
              ).astype(F32)                                              # (B, N)
    memb_bn = onehot
    memb_nb = jnp.transpose(onehot)                                      # (N, B)

    a_b16 = a.astype(BF16)     # 0/1 adjacency: exact in bf16, MXU-native, half the HBM

    # Fused GraphConv weights: [w_root ; w_rel] stacked on the contraction dim.
    w1s = jnp.concatenate([params["conv1"]["w_root"], params["conv1"]["w_rel"]], axis=0)
    w2s = jnp.concatenate([params["conv2"]["w_root"], params["conv2"]["w_rel"]], axis=0)
    w3s = jnp.concatenate([params["conv3"]["w_root"], params["conv3"]["w_rel"]], axis=0)
    # Packed small parameters (fewer DMAs / VMEM tiles).
    cb_all = jnp.concatenate([params["conv1"]["b"], params["conv2"]["b"],
                              params["conv3"]["b"]], axis=0)             # (3, H)
    pw_all = jnp.concatenate([params["pool1"]["w"].T, params["pool2"]["w"].T,
                              params["pool3"]["w"].T], axis=1)           # (H, 3)
    pb_all = jnp.concatenate([params["pool1"]["b"], params["pool2"]["b"],
                              params["pool3"]["b"]], axis=0)             # (3, 1)
    lin1 = jnp.concatenate([params["lin"]["w1"], params["lin"]["b1"]], axis=0)  # (2H+1, H)
    lin2 = jnp.concatenate([params["lin"]["w2"], params["lin"]["b2"]], axis=0)  # (H+1, H/2)
    # Lane-dense head: pad lin3 to 128 output columns; padded logits = -1e30 so the
    # in-kernel log_softmax over 128 lanes is exact on the real classes.
    pad = LANE - num_classes
    w3p = jnp.pad(params["lin"]["w3"], ((0, 0), (0, pad)))
    b3p = jnp.pad(params["lin"]["b3"], ((0, 0), (0, pad)), constant_values=-BIG)
    lin3 = jnp.concatenate([w3p, b3p], axis=0)                           # (H/2+1, 128)

    # Rough resident-VMEM estimate (A bf16 + NxN f32 temporaries + node features).
    vmem_est = 14 * n * n + 32 * n * (nhid + num_graphs + num_features) + (2 << 20)
    vmem_limit = int(min(max(vmem_est, 32 * 1024 * 1024), 100 * 1024 * 1024))

    out_padded = pl.pallas_call(
        _build_fused_kernel(ratio),
        out_shape=jax.ShapeDtypeStruct((num_graphs, LANE), F32),
        in_specs=[VMEM_SPEC] * 13,
        out_specs=VMEM_SPEC,
        compiler_params=pltpu.CompilerParams(vmem_limit_bytes=vmem_limit),
    )(a_b16, x, memb_bn, memb_nb, w1s, w2s, w3s, cb_all, pw_all, pb_all,
      lin1, lin2, lin3)
    return out_padded[:, :num_classes]


# ---------------------------------------------------------------- params / data

def init_params(key, num_features, nhid, num_classes):
    ks = jax.random.split(key, 20)

    def w(k, i, o):
        return 0.1 * jax.random.normal(k, (i, o), F32)

    params = {}
    for i in range(3):
        in_d = num_features if i == 0 else nhid
        params[f"conv{i + 1}"] = dict(
            w_root=w(ks[3 * i + 0], in_d, nhid),
            w_rel=w(ks[3 * i + 1], in_d, nhid),
            b=0.1 * jax.random.normal(ks[3 * i + 2], (1, nhid), F32),
        )
        params[f"pool{i + 1}"] = dict(
            w=0.1 * jax.random.normal(ks[9 + i], (1, nhid), F32),
            b=jnp.zeros((1, 1), F32),
        )
    nh2 = nhid // 2
    params["lin"] = dict(
        w1=w(ks[12], 2 * nhid, nhid), b1=0.1 * jax.random.normal(ks[13], (1, nhid), F32),
        w2=w(ks[14], nhid, nh2),      b2=0.1 * jax.random.normal(ks[15], (1, nh2), F32),
        w3=w(ks[16], nh2, num_classes),
        b3=0.1 * jax.random.normal(ks[17], (1, num_classes), F32),
    )
    return params


def build_example_graphs(key, num_graphs, nodes_per_graph, num_features):
    n = num_graphs * nodes_per_graph
    x = jax.random.normal(key, (n, num_features), F32)
    src, dst = [], []
    for g in range(num_graphs):
        off = g * nodes_per_graph
        for i in range(nodes_per_graph):                 # symmetric ring per graph
            j = (i + 1) % nodes_per_graph
            src += [off + i, off + j]
            dst += [off + j, off + i]
    edge_index = jnp.array([src, dst], dtype=jnp.int32)  # (2, E)
    batch = jnp.repeat(jnp.arange(num_graphs, dtype=jnp.int32), nodes_per_graph)
    a = jnp.zeros((n, n), F32).at[edge_index[1], edge_index[0]].set(1.0)  # A[dst, src]
    return x, edge_index, batch, a


# ---------------------------------------------------------------- main

if __name__ == "__main__":
    NUM_FEATURES = 4
    NHID = 32
    NUM_CLASSES = 3
    RATIO = 0.5
    NUM_GRAPHS = 2
    NODES_PER_GRAPH = 8

    root = jax.random.PRNGKey(0)
    k_params, k_data = jax.random.split(root)

    params = init_params(k_params, NUM_FEATURES, NHID, NUM_CLASSES)
    x, edge_index, batch, a = build_example_graphs(
        k_data, NUM_GRAPHS, NODES_PER_GRAPH, NUM_FEATURES)

    out = net_forward(params, x, a, batch, NUM_GRAPHS, RATIO)
    out = jax.block_until_ready(out)

    assert out.shape == (NUM_GRAPHS, NUM_CLASSES)
    assert bool(jnp.all(jnp.isfinite(out)))
    print("KERNEL_OK")
</pallas_src>

<mosaic_0001>
module attributes {stable_mosaic.version = 11 : i64} {
  func.func @kernel(%arg0: memref<16x16xbf16, #tpu.memory_space<vmem>>, %arg1: memref<16x4xf32, #tpu.memory_space<vmem>>, %arg2: memref<2x16xf32, #tpu.memory_space<vmem>>, %arg3: memref<16x2xf32, #tpu.memory_space<vmem>>, %arg4: memref<8x32xf32, #tpu.memory_space<vmem>>, %arg5: memref<64x32xf32, #tpu.memory_space<vmem>>, %arg6: memref<64x32xf32, #tpu.memory_space<vmem>>, %arg7: memref<3x32xf32, #tpu.memory_space<vmem>>, %arg8: memref<32x3xf32, #tpu.memory_space<vmem>>, %arg9: memref<3x1xf32, #tpu.memory_space<vmem>>, %arg10: memref<65x32xf32, #tpu.memory_space<vmem>>, %arg11: memref<33x16xf32, #tpu.memory_space<vmem>>, %arg12: memref<17x128xf32, #tpu.memory_space<vmem>>, %arg13: memref<2x128xf32, #tpu.memory_space<vmem>>) attributes {dimension_semantics = [], scalar_prefetch = 0 : i64, scratch_operands = 0 : i64, tpu.core_type = #tpu.core_type<tc>} {
    %c0 = arith.constant 0 : index
    %c0_0 = arith.constant 0 : index
    %0 = vector.load %arg0[%c0, %c0_0] : memref<16x16xbf16, #tpu.memory_space<vmem>>, vector<16x16xbf16>
    %c0_1 = arith.constant 0 : index
    %c0_2 = arith.constant 0 : index
    %1 = vector.load %arg2[%c0_1, %c0_2] : memref<2x16xf32, #tpu.memory_space<vmem>>, vector<2x16xf32>
    %c0_3 = arith.constant 0 : index
    %c0_4 = arith.constant 0 : index
    %2 = vector.load %arg3[%c0_3, %c0_4] : memref<16x2xf32, #tpu.memory_space<vmem>>, vector<16x2xf32>
    %3 = tpu.iota {dimensions = array<i32: 0>} : vector<16x16xi32>
    %4 = tpu.iota {dimensions = array<i32: 1>} : vector<16x16xi32>
    %5 = arith.cmpi eq, %3, %4 : vector<16x16xi32>
    %6 = arith.extui %5 : vector<16x16xi1> to vector<16x16xi32>
    %7 = arith.sitofp %6 : vector<16x16xi32> to vector<16x16xf32>
    %8 = arith.truncf %7 : vector<16x16xf32> to vector<16x16xbf16>
    %cst = arith.constant 1.000000e+00 : bf16
    %9 = vector.broadcast %cst : bf16 to vector<1x16xbf16>
    %cst_5 = arith.constant 1.000000e+00 : f32
    %10 = vector.broadcast %cst_5 : f32 to vector<16x1xf32>
    %cst_6 = arith.constant dense<0.000000e+00> : vector<16x16xf32>
    %11 = tpu.matmul %2, %1, %cst_6 {dimension_numbers = #tpu.dot_dimension_numbers<[1], [0], [0], [1], [0, 0, 1, 1], [], []>} : vector<16x2xf32>, vector<2x16xf32>, vector<16x16xf32> -> vector<16x16xf32>
    %c0_7 = arith.constant 0 : index
    %c0_8 = arith.constant 0 : index
    %12 = vector.load %arg1[%c0_7, %c0_8] : memref<16x4xf32, #tpu.memory_space<vmem>>, vector<16x4xf32>
    %cst_9 = arith.constant 1.000000e+00 : f32
    %13 = vector.broadcast %cst_9 : f32 to vector<16x1xf32>
    %cst_10 = arith.constant 0.000000e+00 : f32
    %14 = vector.broadcast %cst_10 : f32 to vector<2x64xf32>
    %15 = arith.truncf %12 : vector<16x4xf32> to vector<16x4xbf16>
    %cst_11 = arith.constant dense<0.000000e+00> : vector<16x4xf32>
    %16 = tpu.matmul %0, %15, %cst_11 {dimension_numbers = #tpu.dot_dimension_numbers<[1], [0], [0], [1], [0, 0, 1, 1], [], []>} : vector<16x16xbf16>, vector<16x4xbf16>, vector<16x4xf32> -> vector<16x4xf32>
    %17 = tpu.concatenate %12, %16 in 1 : vector<16x4xf32>, vector<16x4xf32> -> vector<16x8xf32>
    %c0_12 = arith.constant 0 : index
    %c0_13 = arith.constant 0 : index
    %18 = vector.load %arg7[%c0_12, %c0_13] : memref<3x32xf32, #tpu.memory_space<vmem>>, vector<1x32xf32>
    %c0_14 = arith.constant 0 : index
    %c0_15 = arith.constant 0 : index
    %19 = vector.load %arg4[%c0_14, %c0_15] : memref<8x32xf32, #tpu.memory_space<vmem>>, vector<8x32xf32>
    %cst_16 = arith.constant dense<0.000000e+00> : vector<16x32xf32>
    %20 = tpu.matmul %17, %19, %cst_16 {dimension_numbers = #tpu.dot_dimension_numbers<[1], [0], [0], [1], [0, 0, 1, 1], [], []>} : vector<16x8xf32>, vector<8x32xf32>, vector<16x32xf32> -> vector<16x32xf32>
    %21 = vector.broadcast %18 : vector<1x32xf32> to vector<16x32xf32>
    %22 = arith.addf %20, %21 : vector<16x32xf32>
    %cst_17 = arith.constant 0.000000e+00 : f32
    %23 = vector.broadcast %cst_17 : f32 to vector<16x32xf32>
    %24 = arith.maximumf %22, %23 : vector<16x32xf32>
    %25 = arith.truncf %13 : vector<16x1xf32> to vector<16x1xbf16>
    %cst_18 = arith.constant dense<0.000000e+00> : vector<16x1xf32>
    %26 = tpu.matmul %0, %25, %cst_18 {dimension_numbers = #tpu.dot_dimension_numbers<[1], [0], [0], [1], [0, 0, 1, 1], [], []>} : vector<16x16xbf16>, vector<16x1xbf16>, vector<16x1xf32> -> vector<16x1xf32>
    %cst_19 = arith.constant 1.000000e+00 : f32
    %27 = vector.broadcast %cst_19 : f32 to vector<16x1xf32>
    %28 = arith.addf %26, %27 : vector<16x1xf32>
    %29 = arith.mulf %13, %28 : vector<16x1xf32>
    %cst_20 = arith.constant 0.000000e+00 : f32
    %30 = vector.broadcast %cst_20 : f32 to vector<16x1xf32>
    %31 = arith.cmpf ogt, %29, %30 : vector<16x1xf32>
    %32 = math.rsqrt %29 : vector<16x1xf32>
    %cst_21 = arith.constant 0.000000e+00 : f32
    %33 = vector.broadcast %cst_21 : f32 to vector<16x1xf32>
    %34 = arith.select %31, %32, %33 : vector<16x1xi1>, vector<16x1xf32>
    %35 = vector.broadcast %34 : vector<16x1xf32> to vector<16x32xf32>
    %36 = arith.mulf %35, %24 : vector<16x32xf32>
    %37 = arith.truncf %36 : vector<16x32xf32> to vector<16x32xbf16>
    %cst_22 = arith.constant dense<0.000000e+00> : vector<16x32xf32>
    %38 = tpu.matmul %0, %37, %cst_22 {dimension_numbers = #tpu.dot_dimension_numbers<[1], [0], [0], [1], [0, 0, 1, 1], [], []>} : vector<16x16xbf16>, vector<16x32xbf16>, vector<16x32xf32> -> vector<16x32xf32>
    %39 = arith.addf %38, %36 : vector<16x32xf32>
    %c0_23 = arith.constant 0 : index
    %c0_24 = arith.constant 0 : index
    %40 = vector.load %arg8[%c0_23, %c0_24] : memref<32x3xf32, #tpu.memory_space<vmem>>, vector<32x1xf32>
    %c0_25 = arith.constant 0 : index
    %c0_26 = arith.constant 0 : index
    %41 = vector.load %arg9[%c0_25, %c0_26] : memref<3x1xf32, #tpu.memory_space<vmem>>, vector<1x1xf32>
    %cst_27 = arith.constant dense<0.000000e+00> : vector<16x1xf32>
    %42 = tpu.matmul %39, %40, %cst_27 {dimension_numbers = #tpu.dot_dimension_numbers<[1], [0], [0], [1], [0, 0, 1, 1], [], []>} : vector<16x32xf32>, vector<32x1xf32>, vector<16x1xf32> -> vector<16x1xf32>
    %43 = arith.mulf %34, %42 : vector<16x1xf32>
    %44 = vector.broadcast %41 : vector<1x1xf32> to vector<16x1xf32>
    %45 = arith.addf %43, %44 : vector<16x1xf32>
    %cst_28 = arith.constant 0.000000e+00 : f32
    %46 = vector.broadcast %cst_28 : f32 to vector<16x1xf32>
    %47 = arith.cmpf ogt, %13, %46 : vector<16x1xf32>
    %cst_29 = arith.constant -1.000000e+30 : f32
    %48 = vector.broadcast %cst_29 : f32 to vector<16x1xf32>
    %49 = arith.select %47, %45, %48 : vector<16x1xi1>, vector<16x1xf32>
    %50 = arith.truncf %49 : vector<16x1xf32> to vector<16x1xbf16>
    %51 = vector.broadcast %50 : vector<16x1xbf16> to vector<16x16xbf16>
    %52 = arith.mulf %8, %51 : vector<16x16xbf16>
    %cst_30 = arith.constant dense<0.000000e+00> : vector<1x16xf32>
    %53 = tpu.matmul %9, %52, %cst_30 {dimension_numbers = #tpu.dot_dimension_numbers<[1], [0], [0], [1], [0, 0, 1, 1], [], []>} : vector<1x16xbf16>, vector<16x16xbf16>, vector<1x16xf32> -> vector<1x16xf32>
    %54 = arith.extf %50 : vector<16x1xbf16> to vector<16x1xf32>
    %55 = vector.broadcast %53 : vector<1x16xf32> to vector<16x16xf32>
    %56 = vector.broadcast %54 : vector<16x1xf32> to vector<16x16xf32>
    %57 = arith.cmpf ogt, %55, %56 : vector<16x16xf32>
    %58 = vector.broadcast %53 : vector<1x16xf32> to vector<16x16xf32>
    %59 = vector.broadcast %54 : vector<16x1xf32> to vector<16x16xf32>
    %60 = arith.cmpf oeq, %58, %59 : vector<16x16xf32>
    %61 = arith.cmpi slt, %4, %3 : vector<16x16xi32>
    %62 = arith.andi %60, %61 : vector<16x16xi1>
    %63 = arith.ori %57, %62 : vector<16x16xi1>
    %64 = arith.extui %63 : vector<16x16xi1> to vector<16x16xi32>
    %65 = arith.sitofp %64 : vector<16x16xi32> to vector<16x16xf32>
    %66 = arith.mulf %11, %65 : vector<16x16xf32>
    %cst_31 = arith.constant dense<0.000000e+00> : vector<16x1xf32>
    %67 = tpu.matmul %66, %10, %cst_31 {dimension_numbers = #tpu.dot_dimension_numbers<[1], [0], [0], [1], [0, 0, 1, 1], [], []>} : vector<16x16xf32>, vector<16x1xf32>, vector<16x1xf32> -> vector<16x1xf32>
    %cst_32 = arith.constant dense<0.000000e+00> : vector<2x1xf32>
    %68 = tpu.matmul %1, %13, %cst_32 {dimension_numbers = #tpu.dot_dimension_numbers<[1], [0], [0], [1], [0, 0, 1, 1], [], []>} : vector<2x16xf32>, vector<16x1xf32>, vector<2x1xf32> -> vector<2x1xf32>
    %cst_33 = arith.constant 5.000000e-01 : f32
    %69 = vector.broadcast %cst_33 : f32 to vector<2x1xf32>
    %70 = arith.mulf %69, %68 : vector<2x1xf32>
    %71 = math.ceil %70 : vector<2x1xf32>
    %cst_34 = arith.constant dense<0.000000e+00> : vector<16x1xf32>
    %72 = tpu.matmul %2, %71, %cst_34 {dimension_numbers = #tpu.dot_dimension_numbers<[1], [0], [0], [1], [0, 0, 1, 1], [], []>} : vector<16x2xf32>, vector<2x1xf32>, vector<16x1xf32> -> vector<16x1xf32>
    %cst_35 = arith.constant 0.000000e+00 : f32
    %73 = vector.broadcast %cst_35 : f32 to vector<16x1xf32>
    %74 = arith.cmpf ogt, %13, %73 : vector<16x1xf32>
    %75 = arith.cmpf olt, %67, %72 : vector<16x1xf32>
    %76 = arith.andi %74, %75 : vector<16x1xi1>
    %77 = arith.extui %76 : vector<16x1xi1> to vector<16x1xi32>
    %78 = arith.sitofp %77 : vector<16x1xi32> to vector<16x1xf32>
    %79 = math.tanh %45 : vector<16x1xf32>
    %80 = vector.broadcast %79 : vector<16x1xf32> to vector<16x32xf32>
    %81 = arith.mulf %24, %80 : vector<16x32xf32>
    %82 = vector.broadcast %78 : vector<16x1xf32> to vector<16x32xf32>
    %83 = arith.mulf %81, %82 : vector<16x32xf32>
    %cst_36 = arith.constant dense<0.000000e+00> : vector<2x1xf32>
    %84 = tpu.matmul %1, %78, %cst_36 {dimension_numbers = #tpu.dot_dimension_numbers<[1], [0], [0], [1], [0, 0, 1, 1], [], []>} : vector<2x16xf32>, vector<16x1xf32>, vector<2x1xf32> -> vector<2x1xf32>
    %cst_37 = arith.constant dense<0.000000e+00> : vector<2x32xf32>
    %85 = tpu.matmul %1, %83, %cst_37 {dimension_numbers = #tpu.dot_dimension_numbers<[1], [0], [0], [1], [0, 0, 1, 1], [], []>} : vector<2x16xf32>, vector<16x32xf32>, vector<2x32xf32> -> vector<2x32xf32>
    %cst_38 = arith.constant 1.000000e+00 : f32
    %86 = vector.broadcast %cst_38 : f32 to vector<2x1xf32>
    %87 = arith.maximumf %84, %86 : vector<2x1xf32>
    %88 = vector.broadcast %87 : vector<2x1xf32> to vector<2x32xf32>
    %89 = arith.divf %85, %88 : vector<2x32xf32>
    %cst_39 = arith.constant 0.000000e+00 : f32
    %90 = vector.broadcast %cst_39 : f32 to vector<16x1xf32>
    %91 = arith.cmpf ogt, %78, %90 : vector<16x1xf32>
    %cst_40 = arith.constant -1.000000e+30 : f32
    %92 = vector.shape_cast %91 : vector<16x1xi1> to vector<16x1xi1>
    %93 = vector.broadcast %92 : vector<16x1xi1> to vector<16x32xi1>
    %94 = vector.broadcast %cst_40 : f32 to vector<16x32xf32>
    %95 = arith.select %93, %83, %94 : vector<16x32xi1>, vector<16x32xf32>
    %96 = vector.shape_cast %95 : vector<16x32xf32> to vector<2x8x32xf32>
    %cst_41 = arith.constant dense<0xFF800000> : vector<2x32xf32>
    %97 = vector.multi_reduction <maximumf>, %96, %cst_41 [1] : vector<2x8x32xf32> to vector<2x32xf32>
    %cst_42 = arith.constant 0.000000e+00 : f32
    %98 = vector.broadcast %cst_42 : f32 to vector<2x1xf32>
    %99 = arith.cmpf ogt, %84, %98 : vector<2x1xf32>
    %cst_43 = arith.constant 0.000000e+00 : f32
    %100 = vector.shape_cast %99 : vector<2x1xi1> to vector<2x1xi1>
    %101 = vector.broadcast %100 : vector<2x1xi1> to vector<2x32xi1>
    %102 = vector.broadcast %cst_43 : f32 to vector<2x32xf32>
    %103 = arith.select %101, %97, %102 : vector<2x32xi1>, vector<2x32xf32>
    %104 = tpu.concatenate %103, %89 in 1 : vector<2x32xf32>, vector<2x32xf32> -> vector<2x64xf32>
    %105 = arith.addf %14, %104 : vector<2x64xf32>
    %106 = arith.truncf %83 : vector<16x32xf32> to vector<16x32xbf16>
    %cst_44 = arith.constant dense<0.000000e+00> : vector<16x32xf32>
    %107 = tpu.matmul %0, %106, %cst_44 {dimension_numbers = #tpu.dot_dimension_numbers<[1], [0], [0], [1], [0, 0, 1, 1], [], []>} : vector<16x16xbf16>, vector<16x32xbf16>, vector<16x32xf32> -> vector<16x32xf32>
    %108 = tpu.concatenate %83, %107 in 1 : vector<16x32xf32>, vector<16x32xf32> -> vector<16x64xf32>
    %c1 = arith.constant 1 : index
    %c0_45 = arith.constant 0 : index
    %109 = vector.load %arg7[%c1, %c0_45] : memref<3x32xf32, #tpu.memory_space<vmem>>, vector<1x32xf32>
    %c0_46 = arith.constant 0 : index
    %c0_47 = arith.constant 0 : index
    %110 = vector.load %arg5[%c0_46, %c0_47] : memref<64x32xf32, #tpu.memory_space<vmem>>, vector<64x32xf32>
    %cst_48 = arith.constant dense<0.000000e+00> : vector<16x32xf32>
    %111 = tpu.matmul %108, %110, %cst_48 {dimension_numbers = #tpu.dot_dimension_numbers<[1], [0], [0], [1], [0, 0, 1, 1], [], []>} : vector<16x64xf32>, vector<64x32xf32>, vector<16x32xf32> -> vector<16x32xf32>
    %112 = vector.broadcast %109 : vector<1x32xf32> to vector<16x32xf32>
    %113 = arith.addf %111, %112 : vector<16x32xf32>
    %cst_49 = arith.constant 0.000000e+00 : f32
    %114 = vector.broadcast %cst_49 : f32 to vector<16x32xf32>
    %115 = arith.maximumf %113, %114 : vector<16x32xf32>
    %116 = arith.truncf %78 : vector<16x1xf32> to vector<16x1xbf16>
    %cst_50 = arith.constant dense<0.000000e+00> : vector<16x1xf32>
    %117 = tpu.matmul %0, %116, %cst_50 {dimension_numbers = #tpu.dot_dimension_numbers<[1], [0], [0], [1], [0, 0, 1, 1], [], []>} : vector<16x16xbf16>, vector<16x1xbf16>, vector<16x1xf32> -> vector<16x1xf32>
    %cst_51 = arith.constant 1.000000e+00 : f32
    %118 = vector.broadcast %cst_51 : f32 to vector<16x1xf32>
    %119 = arith.addf %117, %118 : vector<16x1xf32>
    %120 = arith.mulf %78, %119 : vector<16x1xf32>
    %cst_52 = arith.constant 0.000000e+00 : f32
    %121 = vector.broadcast %cst_52 : f32 to vector<16x1xf32>
    %122 = arith.cmpf ogt, %120, %121 : vector<16x1xf32>
    %123 = math.rsqrt %120 : vector<16x1xf32>
    %cst_53 = arith.constant 0.000000e+00 : f32
    %124 = vector.broadcast %cst_53 : f32 to vector<16x1xf32>
    %125 = arith.select %122, %123, %124 : vector<16x1xi1>, vector<16x1xf32>
    %126 = vector.broadcast %125 : vector<16x1xf32> to vector<16x32xf32>
    %127 = arith.mulf %126, %115 : vector<16x32xf32>
    %128 = arith.truncf %127 : vector<16x32xf32> to vector<16x32xbf16>
    %cst_54 = arith.constant dense<0.000000e+00> : vector<16x32xf32>
    %129 = tpu.matmul %0, %128, %cst_54 {dimension_numbers = #tpu.dot_dimension_numbers<[1], [0], [0], [1], [0, 0, 1, 1], [], []>} : vector<16x16xbf16>, vector<16x32xbf16>, vector<16x32xf32> -> vector<16x32xf32>
    %130 = arith.addf %129, %127 : vector<16x32xf32>
    %c0_55 = arith.constant 0 : index
    %c1_56 = arith.constant 1 : index
    %131 = vector.load %arg8[%c0_55, %c1_56] : memref<32x3xf32, #tpu.memory_space<vmem>>, vector<32x1xf32>
    %c1_57 = arith.constant 1 : index
    %c0_58 = arith.constant 0 : index
    %132 = vector.load %arg9[%c1_57, %c0_58] : memref<3x1xf32, #tpu.memory_space<vmem>>, vector<1x1xf32>
    %cst_59 = arith.constant dense<0.000000e+00> : vector<16x1xf32>
    %133 = tpu.matmul %130, %131, %cst_59 {dimension_numbers = #tpu.dot_dimension_numbers<[1], [0], [0], [1], [0, 0, 1, 1], [], []>} : vector<16x32xf32>, vector<32x1xf32>, vector<16x1xf32> -> vector<16x1xf32>
    %134 = arith.mulf %125, %133 : vector<16x1xf32>
    %135 = vector.broadcast %132 : vector<1x1xf32> to vector<16x1xf32>
    %136 = arith.addf %134, %135 : vector<16x1xf32>
    %cst_60 = arith.constant 0.000000e+00 : f32
    %137 = vector.broadcast %cst_60 : f32 to vector<16x1xf32>
    %138 = arith.cmpf ogt, %78, %137 : vector<16x1xf32>
    %cst_61 = arith.constant -1.000000e+30 : f32
    %139 = vector.broadcast %cst_61 : f32 to vector<16x1xf32>
    %140 = arith.select %138, %136, %139 : vector<16x1xi1>, vector<16x1xf32>
    %141 = arith.truncf %140 : vector<16x1xf32> to vector<16x1xbf16>
    %142 = vector.broadcast %141 : vector<16x1xbf16> to vector<16x16xbf16>
    %143 = arith.mulf %8, %142 : vector<16x16xbf16>
    %cst_62 = arith.constant dense<0.000000e+00> : vector<1x16xf32>
    %144 = tpu.matmul %9, %143, %cst_62 {dimension_numbers = #tpu.dot_dimension_numbers<[1], [0], [0], [1], [0, 0, 1, 1], [], []>} : vector<1x16xbf16>, vector<16x16xbf16>, vector<1x16xf32> -> vector<1x16xf32>
    %145 = arith.extf %141 : vector<16x1xbf16> to vector<16x1xf32>
    %146 = vector.broadcast %144 : vector<1x16xf32> to vector<16x16xf32>
    %147 = vector.broadcast %145 : vector<16x1xf32> to vector<16x16xf32>
    %148 = arith.cmpf ogt, %146, %147 : vector<16x16xf32>
    %149 = vector.broadcast %144 : vector<1x16xf32> to vector<16x16xf32>
    %150 = vector.broadcast %145 : vector<16x1xf32> to vector<16x16xf32>
    %151 = arith.cmpf oeq, %149, %150 : vector<16x16xf32>
    %152 = arith.cmpi slt, %4, %3 : vector<16x16xi32>
    %153 = arith.andi %151, %152 : vector<16x16xi1>
    %154 = arith.ori %148, %153 : vector<16x16xi1>
    %155 = arith.extui %154 : vector<16x16xi1> to vector<16x16xi32>
    %156 = arith.sitofp %155 : vector<16x16xi32> to vector<16x16xf32>
    %157 = arith.mulf %11, %156 : vector<16x16xf32>
    %cst_63 = arith.constant dense<0.000000e+00> : vector<16x1xf32>
    %158 = tpu.matmul %157, %10, %cst_63 {dimension_numbers = #tpu.dot_dimension_numbers<[1], [0], [0], [1], [0, 0, 1, 1], [], []>} : vector<16x16xf32>, vector<16x1xf32>, vector<16x1xf32> -> vector<16x1xf32>
    %cst_64 = arith.constant dense<0.000000e+00> : vector<2x1xf32>
    %159 = tpu.matmul %1, %78, %cst_64 {dimension_numbers = #tpu.dot_dimension_numbers<[1], [0], [0], [1], [0, 0, 1, 1], [], []>} : vector<2x16xf32>, vector<16x1xf32>, vector<2x1xf32> -> vector<2x1xf32>
    %cst_65 = arith.constant 5.000000e-01 : f32
    %160 = vector.broadcast %cst_65 : f32 to vector<2x1xf32>
    %161 = arith.mulf %160, %159 : vector<2x1xf32>
    %162 = math.ceil %161 : vector<2x1xf32>
    %cst_66 = arith.constant dense<0.000000e+00> : vector<16x1xf32>
    %163 = tpu.matmul %2, %162, %cst_66 {dimension_numbers = #tpu.dot_dimension_numbers<[1], [0], [0], [1], [0, 0, 1, 1], [], []>} : vector<16x2xf32>, vector<2x1xf32>, vector<16x1xf32> -> vector<16x1xf32>
    %cst_67 = arith.constant 0.000000e+00 : f32
    %164 = vector.broadcast %cst_67 : f32 to vector<16x1xf32>
    %165 = arith.cmpf ogt, %78, %164 : vector<16x1xf32>
    %166 = arith.cmpf olt, %158, %163 : vector<16x1xf32>
    %167 = arith.andi %165, %166 : vector<16x1xi1>
    %168 = arith.extui %167 : vector<16x1xi1> to vector<16x1xi32>
    %169 = arith.sitofp %168 : vector<16x1xi32> to vector<16x1xf32>
    %170 = math.tanh %136 : vector<16x1xf32>
    %171 = vector.broadcast %170 : vector<16x1xf32> to vector<16x32xf32>
    %172 = arith.mulf %115, %171 : vector<16x32xf32>
    %173 = vector.broadcast %169 : vector<16x1xf32> to vector<16x32xf32>
    %174 = arith.mulf %172, %173 : vector<16x32xf32>
    %cst_68 = arith.constant dense<0.000000e+00> : vector<2x1xf32>
    %175 = tpu.matmul %1, %169, %cst_68 {dimension_numbers = #tpu.dot_dimension_numbers<[1], [0], [0], [1], [0, 0, 1, 1], [], []>} : vector<2x16xf32>, vector<16x1xf32>, vector<2x1xf32> -> vector<2x1xf32>
    %cst_69 = arith.constant dense<0.000000e+00> : vector<2x32xf32>
    %176 = tpu.matmul %1, %174, %cst_69 {dimension_numbers = #tpu.dot_dimension_numbers<[1], [0], [0], [1], [0, 0, 1, 1], [], []>} : vector<2x16xf32>, vector<16x32xf32>, vector<2x32xf32> -> vector<2x32xf32>
    %cst_70 = arith.constant 1.000000e+00 : f32
    %177 = vector.broadcast %cst_70 : f32 to vector<2x1xf32>
    %178 = arith.maximumf %175, %177 : vector<2x1xf32>
    %179 = vector.broadcast %178 : vector<2x1xf32> to vector<2x32xf32>
    %180 = arith.divf %176, %179 : vector<2x32xf32>
    %cst_71 = arith.constant 0.000000e+00 : f32
    %181 = vector.broadcast %cst_71 : f32 to vector<16x1xf32>
    %182 = arith.cmpf ogt, %169, %181 : vector<16x1xf32>
    %cst_72 = arith.constant -1.000000e+30 : f32
    %183 = vector.shape_cast %182 : vector<16x1xi1> to vector<16x1xi1>
    %184 = vector.broadcast %183 : vector<16x1xi1> to vector<16x32xi1>
    %185 = vector.broadcast %cst_72 : f32 to vector<16x32xf32>
    %186 = arith.select %184, %174, %185 : vector<16x32xi1>, vector<16x32xf32>
    %187 = vector.shape_cast %186 : vector<16x32xf32> to vector<2x8x32xf32>
    %cst_73 = arith.constant dense<0xFF800000> : vector<2x32xf32>
    %188 = vector.multi_reduction <maximumf>, %187, %cst_73 [1] : vector<2x8x32xf32> to vector<2x32xf32>
    %cst_74 = arith.constant 0.000000e+00 : f32
    %189 = vector.broadcast %cst_74 : f32 to vector<2x1xf32>
    %190 = arith.cmpf ogt, %175, %189 : vector<2x1xf32>
    %cst_75 = arith.constant 0.000000e+00 : f32
    %191 = vector.shape_cast %190 : vector<2x1xi1> to vector<2x1xi1>
    %192 = vector.broadcast %191 : vector<2x1xi1> to vector<2x32xi1>
    %193 = vector.broadcast %cst_75 : f32 to vector<2x32xf32>
    %194 = arith.select %192, %188, %193 : vector<2x32xi1>, vector<2x32xf32>
    %195 = tpu.concatenate %194, %180 in 1 : vector<2x32xf32>, vector<2x32xf32> -> vector<2x64xf32>
    %196 = arith.addf %105, %195 : vector<2x64xf32>
    %197 = arith.truncf %174 : vector<16x32xf32> to vector<16x32xbf16>
    %cst_76 = arith.constant dense<0.000000e+00> : vector<16x32xf32>
    %198 = tpu.matmul %0, %197, %cst_76 {dimension_numbers = #tpu.dot_dimension_numbers<[1], [0], [0], [1], [0, 0, 1, 1], [], []>} : vector<16x16xbf16>, vector<16x32xbf16>, vector<16x32xf32> -> vector<16x32xf32>
    %199 = tpu.concatenate %174, %198 in 1 : vector<16x32xf32>, vector<16x32xf32> -> vector<16x64xf32>
    %c2 = arith.constant 2 : index
    %c0_77 = arith.constant 0 : index
    %200 = vector.load %arg7[%c2, %c0_77] : memref<3x32xf32, #tpu.memory_space<vmem>>, vector<1x32xf32>
    %c0_78 = arith.constant 0 : index
    %c0_79 = arith.constant 0 : index
    %201 = vector.load %arg6[%c0_78, %c0_79] : memref<64x32xf32, #tpu.memory_space<vmem>>, vector<64x32xf32>
    %cst_80 = arith.constant dense<0.000000e+00> : vector<16x32xf32>
    %202 = tpu.matmul %199, %201, %cst_80 {dimension_numbers = #tpu.dot_dimension_numbers<[1], [0], [0], [1], [0, 0, 1, 1], [], []>} : vector<16x64xf32>, vector<64x32xf32>, vector<16x32xf32> -> vector<16x32xf32>
    %203 = vector.broadcast %200 : vector<1x32xf32> to vector<16x32xf32>
    %204 = arith.addf %202, %203 : vector<16x32xf32>
    %cst_81 = arith.constant 0.000000e+00 : f32
    %205 = vector.broadcast %cst_81 : f32 to vector<16x32xf32>
    %206 = arith.maximumf %204, %205 : vector<16x32xf32>
    %207 = arith.truncf %169 : vector<16x1xf32> to vector<16x1xbf16>
    %cst_82 = arith.constant dense<0.000000e+00> : vector<16x1xf32>
    %208 = tpu.matmul %0, %207, %cst_82 {dimension_numbers = #tpu.dot_dimension_numbers<[1], [0], [0], [1], [0, 0, 1, 1], [], []>} : vector<16x16xbf16>, vector<16x1xbf16>, vector<16x1xf32> -> vector<16x1xf32>
    %cst_83 = arith.constant 1.000000e+00 : f32
    %209 = vector.broadcast %cst_83 : f32 to vector<16x1xf32>
    %210 = arith.addf %208, %209 : vector<16x1xf32>
    %211 = arith.mulf %169, %210 : vector<16x1xf32>
    %cst_84 = arith.constant 0.000000e+00 : f32
    %212 = vector.broadcast %cst_84 : f32 to vector<16x1xf32>
    %213 = arith.cmpf ogt, %211, %212 : vector<16x1xf32>
    %214 = math.rsqrt %211 : vector<16x1xf32>
    %cst_85 = arith.constant 0.000000e+00 : f32
    %215 = vector.broadcast %cst_85 : f32 to vector<16x1xf32>
    %216 = arith.select %213, %214, %215 : vector<16x1xi1>, vector<16x1xf32>
    %217 = vector.broadcast %216 : vector<16x1xf32> to vector<16x32xf32>
    %218 = arith.mulf %217, %206 : vector<16x32xf32>
    %219 = arith.truncf %218 : vector<16x32xf32> to vector<16x32xbf16>
    %cst_86 = arith.constant dense<0.000000e+00> : vector<16x32xf32>
    %220 = tpu.matmul %0, %219, %cst_86 {dimension_numbers = #tpu.dot_dimension_numbers<[1], [0], [0], [1], [0, 0, 1, 1], [], []>} : vector<16x16xbf16>, vector<16x32xbf16>, vector<16x32xf32> -> vector<16x32xf32>
    %221 = arith.addf %220, %218 : vector<16x32xf32>
    %c0_87 = arith.constant 0 : index
    %c2_88 = arith.constant 2 : index
    %222 = vector.load %arg8[%c0_87, %c2_88] : memref<32x3xf32, #tpu.memory_space<vmem>>, vector<32x1xf32>
    %c2_89 = arith.constant 2 : index
    %c0_90 = arith.constant 0 : index
    %223 = vector.load %arg9[%c2_89, %c0_90] : memref<3x1xf32, #tpu.memory_space<vmem>>, vector<1x1xf32>
    %cst_91 = arith.constant dense<0.000000e+00> : vector<16x1xf32>
    %224 = tpu.matmul %221, %222, %cst_91 {dimension_numbers = #tpu.dot_dimension_numbers<[1], [0], [0], [1], [0, 0, 1, 1], [], []>} : vector<16x32xf32>, vector<32x1xf32>, vector<16x1xf32> -> vector<16x1xf32>
    %225 = arith.mulf %216, %224 : vector<16x1xf32>
    %226 = vector.broadcast %223 : vector<1x1xf32> to vector<16x1xf32>
    %227 = arith.addf %225, %226 : vector<16x1xf32>
    %cst_92 = arith.constant 0.000000e+00 : f32
    %228 = vector.broadcast %cst_92 : f32 to vector<16x1xf32>
    %229 = arith.cmpf ogt, %169, %228 : vector<16x1xf32>
    %cst_93 = arith.constant -1.000000e+30 : f32
    %230 = vector.broadcast %cst_93 : f32 to vector<16x1xf32>
    %231 = arith.select %229, %227, %230 : vector<16x1xi1>, vector<16x1xf32>
    %232 = arith.truncf %231 : vector<16x1xf32> to vector<16x1xbf16>
    %233 = vector.broadcast %232 : vector<16x1xbf16> to vector<16x16xbf16>
    %234 = arith.mulf %8, %233 : vector<16x16xbf16>
    %cst_94 = arith.constant dense<0.000000e+00> : vector<1x16xf32>
    %235 = tpu.matmul %9, %234, %cst_94 {dimension_numbers = #tpu.dot_dimension_numbers<[1], [0], [0], [1], [0, 0, 1, 1], [], []>} : vector<1x16xbf16>, vector<16x16xbf16>, vector<1x16xf32> -> vector<1x16xf32>
    %236 = arith.extf %232 : vector<16x1xbf16> to vector<16x1xf32>
    %237 = vector.broadcast %235 : vector<1x16xf32> to vector<16x16xf32>
    %238 = vector.broadcast %236 : vector<16x1xf32> to vector<16x16xf32>
    %239 = arith.cmpf ogt, %237, %238 : vector<16x16xf32>
    %240 = vector.broadcast %235 : vector<1x16xf32> to vector<16x16xf32>
    %241 = vector.broadcast %236 : vector<16x1xf32> to vector<16x16xf32>
    %242 = arith.cmpf oeq, %240, %241 : vector<16x16xf32>
    %243 = arith.cmpi slt, %4, %3 : vector<16x16xi32>
    %244 = arith.andi %242, %243 : vector<16x16xi1>
    %245 = arith.ori %239, %244 : vector<16x16xi1>
    %246 = arith.extui %245 : vector<16x16xi1> to vector<16x16xi32>
    %247 = arith.sitofp %246 : vector<16x16xi32> to vector<16x16xf32>
    %248 = arith.mulf %11, %247 : vector<16x16xf32>
    %cst_95 = arith.constant dense<0.000000e+00> : vector<16x1xf32>
    %249 = tpu.matmul %248, %10, %cst_95 {dimension_numbers = #tpu.dot_dimension_numbers<[1], [0], [0], [1], [0, 0, 1, 1], [], []>} : vector<16x16xf32>, vector<16x1xf32>, vector<16x1xf32> -> vector<16x1xf32>
    %cst_96 = arith.constant dense<0.000000e+00> : vector<2x1xf32>
    %250 = tpu.matmul %1, %169, %cst_96 {dimension_numbers = #tpu.dot_dimension_numbers<[1], [0], [0], [1], [0, 0, 1, 1], [], []>} : vector<2x16xf32>, vector<16x1xf32>, vector<2x1xf32> -> vector<2x1xf32>
    %cst_97 = arith.constant 5.000000e-01 : f32
    %251 = vector.broadcast %cst_97 : f32 to vector<2x1xf32>
    %252 = arith.mulf %251, %250 : vector<2x1xf32>
    %253 = math.ceil %252 : vector<2x1xf32>
    %cst_98 = arith.constant dense<0.000000e+00> : vector<16x1xf32>
    %254 = tpu.matmul %2, %253, %cst_98 {dimension_numbers = #tpu.dot_dimension_numbers<[1], [0], [0], [1], [0, 0, 1, 1], [], []>} : vector<16x2xf32>, vector<2x1xf32>, vector<16x1xf32> -> vector<16x1xf32>
    %cst_99 = arith.constant 0.000000e+00 : f32
    %255 = vector.broadcast %cst_99 : f32 to vector<16x1xf32>
    %256 = arith.cmpf ogt, %169, %255 : vector<16x1xf32>
    %257 = arith.cmpf olt, %249, %254 : vector<16x1xf32>
    %258 = arith.andi %256, %257 : vector<16x1xi1>
    %259 = arith.extui %258 : vector<16x1xi1> to vector<16x1xi32>
    %260 = arith.sitofp %259 : vector<16x1xi32> to vector<16x1xf32>
    %261 = math.tanh %227 : vector<16x1xf32>
    %262 = vector.broadcast %261 : vector<16x1xf32> to vector<16x32xf32>
    %263 = arith.mulf %206, %262 : vector<16x32xf32>
    %264 = vector.broadcast %260 : vector<16x1xf32> to vector<16x32xf32>
    %265 = arith.mulf %263, %264 : vector<16x32xf32>
    %cst_100 = arith.constant dense<0.000000e+00> : vector<2x1xf32>
    %266 = tpu.matmul %1, %260, %cst_100 {dimension_numbers = #tpu.dot_dimension_numbers<[1], [0], [0], [1], [0, 0, 1, 1], [], []>} : vector<2x16xf32>, vector<16x1xf32>, vector<2x1xf32> -> vector<2x1xf32>
    %cst_101 = arith.constant dense<0.000000e+00> : vector<2x32xf32>
    %267 = tpu.matmul %1, %265, %cst_101 {dimension_numbers = #tpu.dot_dimension_numbers<[1], [0], [0], [1], [0, 0, 1, 1], [], []>} : vector<2x16xf32>, vector<16x32xf32>, vector<2x32xf32> -> vector<2x32xf32>
    %cst_102 = arith.constant 1.000000e+00 : f32
    %268 = vector.broadcast %cst_102 : f32 to vector<2x1xf32>
    %269 = arith.maximumf %266, %268 : vector<2x1xf32>
    %270 = vector.broadcast %269 : vector<2x1xf32> to vector<2x32xf32>
    %271 = arith.divf %267, %270 : vector<2x32xf32>
    %cst_103 = arith.constant 0.000000e+00 : f32
    %272 = vector.broadcast %cst_103 : f32 to vector<16x1xf32>
    %273 = arith.cmpf ogt, %260, %272 : vector<16x1xf32>
    %cst_104 = arith.constant -1.000000e+30 : f32
    %274 = vector.shape_cast %273 : vector<16x1xi1> to vector<16x1xi1>
    %275 = vector.broadcast %274 : vector<16x1xi1> to vector<16x32xi1>
    %276 = vector.broadcast %cst_104 : f32 to vector<16x32xf32>
    %277 = arith.select %275, %265, %276 : vector<16x32xi1>, vector<16x32xf32>
    %278 = vector.shape_cast %277 : vector<16x32xf32> to vector<2x8x32xf32>
    %cst_105 = arith.constant dense<0xFF800000> : vector<2x32xf32>
    %279 = vector.multi_reduction <maximumf>, %278, %cst_105 [1] : vector<2x8x32xf32> to vector<2x32xf32>
    %cst_106 = arith.constant 0.000000e+00 : f32
    %280 = vector.broadcast %cst_106 : f32 to vector<2x1xf32>
    %281 = arith.cmpf ogt, %266, %280 : vector<2x1xf32>
    %cst_107 = arith.constant 0.000000e+00 : f32
    %282 = vector.shape_cast %281 : vector<2x1xi1> to vector<2x1xi1>
    %283 = vector.broadcast %282 : vector<2x1xi1> to vector<2x32xi1>
    %284 = vector.broadcast %cst_107 : f32 to vector<2x32xf32>
    %285 = arith.select %283, %279, %284 : vector<2x32xi1>, vector<2x32xf32>
    %286 = tpu.concatenate %285, %271 in 1 : vector<2x32xf32>, vector<2x32xf32> -> vector<2x64xf32>
    %287 = arith.addf %196, %286 : vector<2x64xf32>
    %c0_108 = arith.constant 0 : index
    %c0_109 = arith.constant 0 : index
    %288 = vector.load %arg10[%c0_108, %c0_109] : memref<65x32xf32, #tpu.memory_space<vmem>>, vector<64x32xf32>
    %c64 = arith.constant 64 : index
    %c0_110 = arith.constant 0 : index
    %289 = vector.load %arg10[%c64, %c0_110] : memref<65x32xf32, #tpu.memory_space<vmem>>, vector<1x32xf32>
    %cst_111 = arith.constant dense<0.000000e+00> : vector<2x32xf32>
    %290 = tpu.matmul %287, %288, %cst_111 {dimension_numbers = #tpu.dot_dimension_numbers<[1], [0], [0], [1], [0, 0, 1, 1], [], []>} : vector<2x64xf32>, vector<64x32xf32>, vector<2x32xf32> -> vector<2x32xf32>
    %291 = vector.broadcast %289 : vector<1x32xf32> to vector<2x32xf32>
    %292 = arith.addf %290, %291 : vector<2x32xf32>
    %cst_112 = arith.constant 0.000000e+00 : f32
    %293 = vector.broadcast %cst_112 : f32 to vector<2x32xf32>
    %294 = arith.maximumf %292, %293 : vector<2x32xf32>
    %c0_113 = arith.constant 0 : index
    %c0_114 = arith.constant 0 : index
    %295 = vector.load %arg11[%c0_113, %c0_114] : memref<33x16xf32, #tpu.memory_space<vmem>>, vector<32x16xf32>
    %c32 = arith.constant 32 : index
    %c0_115 = arith.constant 0 : index
    %296 = vector.load %arg11[%c32, %c0_115] : memref<33x16xf32, #tpu.memory_space<vmem>>, vector<1x16xf32>
    %cst_116 = arith.constant dense<0.000000e+00> : vector<2x16xf32>
    %297 = tpu.matmul %294, %295, %cst_116 {dimension_numbers = #tpu.dot_dimension_numbers<[1], [0], [0], [1], [0, 0, 1, 1], [], []>} : vector<2x32xf32>, vector<32x16xf32>, vector<2x16xf32> -> vector<2x16xf32>
    %298 = vector.broadcast %296 : vector<1x16xf32> to vector<2x16xf32>
    %299 = arith.addf %297, %298 : vector<2x16xf32>
    %cst_117 = arith.constant 0.000000e+00 : f32
    %300 = vector.broadcast %cst_117 : f32 to vector<2x16xf32>
    %301 = arith.maximumf %299, %300 : vector<2x16xf32>
    %c0_118 = arith.constant 0 : index
    %c0_119 = arith.constant 0 : index
    %302 = vector.load %arg12[%c0_118, %c0_119] : memref<17x128xf32, #tpu.memory_space<vmem>>, vector<16x128xf32>
    %c16 = arith.constant 16 : index
    %c0_120 = arith.constant 0 : index
    %303 = vector.load %arg12[%c16, %c0_120] : memref<17x128xf32, #tpu.memory_space<vmem>>, vector<1x128xf32>
    %cst_121 = arith.constant dense<0.000000e+00> : vector<2x128xf32>
    %304 = tpu.matmul %301, %302, %cst_121 {dimension_numbers = #tpu.dot_dimension_numbers<[1], [0], [0], [1], [0, 0, 1, 1], [], []>} : vector<2x16xf32>, vector<16x128xf32>, vector<2x128xf32> -> vector<2x128xf32>
    %305 = vector.broadcast %303 : vector<1x128xf32> to vector<2x128xf32>
    %306 = arith.addf %304, %305 : vector<2x128xf32>
    %cst_122 = arith.constant dense<0xFF800000> : vector<2xf32>
    %307 = vector.multi_reduction <maximumf>, %306, %cst_122 [1] : vector<2x128xf32> to vector<2xf32>
    %308 = vector.shape_cast %307 : vector<2xf32> to vector<2x1xf32>
    %309 = vector.broadcast %308 : vector<2x1xf32> to vector<2x128xf32>
    %310 = arith.subf %306, %309 : vector<2x128xf32>
    %311 = math.exp %310 : vector<2x128xf32>
    %cst_123 = arith.constant dense<0.000000e+00> : vector<2xf32>
    %312 = vector.multi_reduction <add>, %311, %cst_123 [1] : vector<2x128xf32> to vector<2xf32>
    %313 = vector.shape_cast %312 : vector<2xf32> to vector<2x1xf32>
    %314 = math.log %313 : vector<2x1xf32>
    %315 = vector.broadcast %314 : vector<2x1xf32> to vector<2x128xf32>
    %316 = arith.subf %310, %315 : vector<2x128xf32>
    %c0_124 = arith.constant 0 : index
    %c0_125 = arith.constant 0 : index
    %317 = vector.load %arg13[%c0_124, %c0_125] : memref<2x128xf32, #tpu.memory_space<vmem>>, vector<2x128xf32>
    tpu.vector_store %arg13[%c0_124, %c0_125], %316 {strides = array<i32>} : memref<2x128xf32, #tpu.memory_space<vmem>>, vector<2x128xf32>,
    return
  }
}

</mosaic_0001>

<bundles_post_ra>
// kernel: net_forward.1
= control target key start
LH: loop header
LB: loop body
LE: loop exit
PB: predicated region body
PF: predicated region fallthrough
CT: control target
= control target key end

     0   :  { %v3686_v2 = vmov 0.0   ;;  %vm3687_vm0 = vmmov 0   ;;  %s4404_s0 = inlined_call_operand.vmem [shape: bf16[16,16], index: 0, kind: input, shape index: {}]   ;;  %s4405_s1 = inlined_call_operand.vmem [shape: f32[16,4], index: 1, kind: input, shape index: {}]   ;;  %s4406_s2 = inlined_call_operand.vmem [shape: f32[2,16], index: 2, kind: input, shape index: {}]   ;;  %s4407_s3 = inlined_call_operand.vmem [shape: f32[16,2], index: 3, kind: input, shape index: {}]   ;;  %s4408_s4 = inlined_call_operand.vmem [shape: f32[8,32], index: 4, kind: input, shape index: {}]   ;;  %s4409_s5 = inlined_call_operand.vmem [shape: f32[64,32], index: 5, kind: input, shape index: {}]   ;;  %s4410_s6 = inlined_call_operand.vmem [shape: f32[64,32], index: 6, kind: input, shape index: {}]   ;;  %s4411_s7 = inlined_call_operand.vmem [shape: f32[3,32], index: 7, kind: input, shape index: {}]   ;;  %s4412_s8 = inlined_call_operand.vmem [shape: f32[32,3], index: 8, kind: input, shape index: {}]   ;;  %s4413_s9 = inlined_call_operand.vmem [shape: f32[3,1], index: 9, kind: input, shape index: {}]   ;;  %s4414_s10 = inlined_call_operand.vmem [shape: f32[65,32], index: 10, kind: input, shape index: {}]   ;;  %s4415_s11 = inlined_call_operand.vmem [shape: f32[33,16], index: 11, kind: input, shape index: {}]   ;;  %s4416_s12 = inlined_call_operand.vmem [shape: f32[17,128], index: 12, kind: input, shape index: {}]   ;;  %s4417_s13 = inlined_call_operand.hbm [shape: f32[2,128], index: 13, kind: output, shape index: {}]  }
   0x1   :  { %v150_v0 = vld [vmem:[%s4405_s1] sm:$0xff]  ;;  %v151_v1 = vld [vmem:[%s4405_s1 + $0x8] sm:$0xff]  ;;  %3188 = vmatprep.subr.bf16.mxu1 %v3686_v2  ;;  %3190 = vmatprep.mubr.msk.bf16.mxu1 %vm3687_vm0, %v3686_v2 }
   0x2   :  { %v152_v3 = vpack.c.bf16 %v151_v1, %v150_v0 }
   0x3   :  { %18 = vsyncpa [#allocation3], 0  ;;  %v3779_v4 = vld [vmem:[%s4404_s0] sm:$0xff]   ;;  %vm158_vm1 = vcmask 130048   ;;  %vm71_vm2 = vcmask 1041408   ;;  %vm64_vm3 = vcmask 15360  }
   0x4   :  { %3189 = vmatpush3.bf16.msra.mxu1 %v152_v3  ;;  %v3789_v5 = vld [vmem:[%s4406_s2] sm:$0x3]  ;;  %v3805_v7 = vld [vmem:[%s4407_s3 + $0x8] sm:$0xff]  ;;  %s3688_s20 = smov 4   ;;  %vm211_vm4 = vcmask 31744   ;;  %vm220_vm5 = vcmask 64512   ;;  %v52_v3 = vlaneseq }
   0x5   :  { %3205 = vmatprep.subr.bf16.mxu1 %v3686_v2  ;;  %v3794_v6 = vld [vmem:[%s4407_s3] sm:$0xff]  ;;  %3183 = vmatprep.subr.msk.mxu0 %vm71_vm2, %v3789_v5  ;;  %v3689_v17 = vmov 1065369472   ;;  %v3690_v20 = vmov 0   ;;  %v3832_v34 = vld [vmem:[%s4412_s8 + $0x8] sm:$0xff]  ;;  %v3857_v46 = vld [vmem:[%s4412_s8 + $0x10] sm:$0xff] }
   0x6   :  { %3185 = vmatprep.mubr.msk.f32.mxu0 %vm64_vm3, %v3794_v6  ;;  %3184 = vmatpush3.msk.msra.mxu0 %vm71_vm2, %v3789_v5  ;;  %v215_v8 = vld [vmem:[%s4408_s4] sm:$0xff]  ;;  %v3862_v47 = vld [vmem:[%s4412_s8 + $0x18] sm:$0xff]  ;;  %vm4419_vm8 = vcmask 261120   ;;  %s3693_s27 = smov 32  }
   0x7   :  { %3191 = vmatmul.mubr.msk.bf16.vlgmr.msra.gmra.mrb[0].mxu1 %vm158_vm1, %v3779_v4  ;;  %3186 = vmatmul.mubr.msk.f32.vlgmr.msra.gmra.mrb[0].mxu0 %vm64_vm3, %v3805_v7  ;;  %v3827_v33 = vld [vmem:[%s4412_s8] sm:$0xff]  ;;  %v3462_v48 = vpack.c.bf16 %v3862_v47, %v3857_v46 }
   0x8   :  { %3207 = vmatprep.mubr.msk.bf16.mxu1 %vm3687_vm0, %v3686_v2  ;;  %3194 = vmatprep.subr.mxu0 %v215_v8  ;;  %v3458_v35 = vpack.c.bf16 %v3832_v34, %v3827_v33  ;;  %v2977_v36 = vld [vmem:[%s4411_s7] ss:$0 sm:$0xff] }
   0x9   :  { %3195 = vmatpush3.msra.mxu0 %v215_v8  ;;  %3572 = vset.pattern.permute.xlu1 %v3690_v20  ;;  %v2984_v55 = vld [vmem:[%s4413_s9] ss:$0 sm:$0xff]  ;;  %v3871_v8 = vshrl.u32 %v52_v3, 7 }
   0xa   :  { %3199 = vmatprep.subr.bf16.mxu0 %v3686_v2  ;;  %3573 = vset.pattern.permute.xlu0 %v3690_v20 }
  0xda   :  { %v196_v9 = vpop.f32.mrb[0].mxu1  ;;  %v3818_v18 = vpop.f32.mrb[0].mxu0 }
  0xdb   :  { %205 = vrot.lane.b32.xlu0 %v196_v9, %s3688_s20  ;;  %v3192_v10 = vpop.f32.mrb[1].mxu1  ;;  %v3820_v19 = vpop.f32.mrb[1].mxu0  ;;  %v3874_v9 = vadd.s32 8, %v3871_v8 }
  0xdc   :  { %v199_v11 = vpop.f32.mrb[2].mxu1  ;;  %v3876_v10 = vand.u32 127, %v52_v3 }
  0xdd   :  { %v3193_v12 = vpop.f32.mrb[3].mxu1 }
  0xde   :  { %vm57_vm9 = vcmp.eq.s32.totalorder %v3871_v8, %v3876_v10  ;;  %vm58_vm10 = vcmp.eq.s32.totalorder %v3874_v9, %v3876_v10  ;;  %vm573_vm11 = vcmp.lt.s32.totalorder %v3876_v10, %v3871_v8  ;;  %vm574_vm12 = vcmp.lt.s32.totalorder %v3876_v10, %v3874_v9 }
  0xdf   :  { %207 = vrot.lane.b32.xlu0 %v199_v11, %s3688_s20  ;;  %v2970_v11 = vsel %vm57_vm9, 1.0, %v3686_v2  ;;  %v2971_v12 = vsel %vm58_vm10, 1.0, %v3686_v2 }
 0x14d   :  { %v206_v13 = vpop.permute.xlu0 %205 }
 0x14e   :  { %v212_v14 = vsel %vm211_vm4, %v150_v0, %v206_v13  ;;  %v3884_v13 = vpack.c.bf16 %v2971_v12, %v2970_v11  ;;  %v1102_v11 = vld [vmem:[%s4409_s5 + $0x18] sm:$0xff] }
 0x14f   :  { %3196 = vmatprep.mubr.msk.f32.mxu0 %vm220_vm5, %v212_v14 }
 0x151   :  { %v208_v15 = vpop.permute.xlu0 %207 }
 0x152   :  { %v213_v16 = vsel %vm211_vm4, %v151_v1, %v208_v15 }
 0x153   :  { %3197 = vmatmul.mubr.msk.f32.vlgmr.msra.gmra.mrb[2].mxu0 %vm220_vm5, %v213_v16  ;;  %v3691_v16 = vmov 1.0|1.0  }
 0x154   :  { %3200 = vmatpush3.bf16.msra.mxu0 %v3689_v17  ;;  %3201 = vmatprep.mubr.msk.bf16.mxu0 %vm3687_vm0, %v3686_v2 }
 0x155   :  { %3459 = vmatprep.subr.bf16.mxu0 %v3458_v35 }
 0x157   :  { %3202 = vmatmul.mubr.msk.bf16.vlgmr.msra.gmra.mrb[4].mxu0 %vm158_vm1, %v3779_v4 }
 0x158   :  { %3461 = vmatpush3.bf16.msra.mxu0 %v3458_v35 }
 0x159   :  { %3463 = vmatprep.subr.bf16.mxu0 %v3462_v48 }
 0x15c   :  { %3465 = vmatpush3.bf16.msra.mxu0 %v3462_v48 }
 0x15d   :  { %3466 = vmatprep.subr.bf16.mxu0 %v3691_v16 }
 0x226   :  { %v3198_v21 = vpop.f32.mrb[2].mxu0 }
 0x227   :  { %v293_v22 = vpop.f32.mrb[3].mxu0  ;;  %v3839_v37 = vadd.f32 %v3198_v21, %v2977_v36  ;;  %v3692_v21 = vmov 0.0|0.0  }
 0x228   :  { %v3841_v38 = vadd.f32 %v2977_v36, %v293_v22  ;;  %v3895_v22 = vsub.s32 0, %v3871_v8  ;;  %v3659_v8 = vld [vmem:[%s4407_s3] sm:$0xff] }
 0x229   :  { %v303_v40 = vmax.f32 %v3839_v37, 0.0 }
 0x22a   :  { %v338_v23 = vpop.f32.mrb[4].mxu0  ;;  %v302_v41 = vmax.f32 %v3841_v38, 0.0 }
 0x22b   :  { %v339_v24 = vadd.f32 1.0, %v338_v23  ;;  %v3203_v25 = vpop.f32.mrb[5].mxu0 }
 0x22c   :  { %v341_v26 = vpop.f32.mrb[6].mxu0 }
 0x22d   :  { %3625 = vrsqrt.f32 %v339_v24  ;;  %v342_v27 = vadd.f32 1.0, %v341_v26  ;;  %v3204_v28 = vpop.f32.mrb[7].mxu0  ;;  %vm345_vm6 = vcmp.gt.f32.partialorder %v339_v24, 0.0 }
 0x22f   :  { %3627 = vrsqrt.f32 %v342_v27  ;;  %vm346_vm7 = vcmp.gt.f32.partialorder %v342_v27, 0.0 }
 0x237   :  { %v3626_v29 = vpop.eup %3625 }
 0x238   :  { %v349_v30 = vsel %vm345_vm6, %v3626_v29, 0.0 }
 0x239   :  { %v3628_v31 = vpop.eup %3627  ;;  %353 = vperm.xlu1 %3572, %v349_v30  }
 0x23a   :  { %v350_v32 = vsel %vm346_vm7, %v3628_v31, 0.0 }
 0x23d   :  { %358 = vperm.xlu1 %3572, %v350_v32  }
 0x2b8   :  { %v354_v39 = vpop.permute.xlu1 %353 }
 0x2b9   :  { %v361_v43 = vmul.f32 %v354_v39, %v302_v41 }
 0x2bc   :  { %v359_v42 = vpop.permute.xlu1 %358 }
 0x2bd   :  { %v362_v44 = vmul.f32 %v359_v42, %v303_v40 }
 0x2bf   :  { %v363_v45 = vpack.c.bf16 %v362_v44, %v361_v43 }
 0x2c1   :  { %3206 = vmatpush3.bf16.msra.mxu1 %v363_v45 }
 0x2c2   :  { %3222 = vmatprep.subr.bf16.mxu1 %v3686_v2 }
 0x2c4   :  { %3208 = vmatmul.mubr.msk.bf16.vlgmr.msra.gmra.mrb[4].mxu1 %vm158_vm1, %v3779_v4 }
 0x2c5   :  { %3224 = vmatprep.mubr.msk.bf16.mxu1 %vm3687_vm0, %v3686_v2 }
 0x397   :  { %v398_v49 = vpop.f32.mrb[4].mxu1 }
 0x398   :  { %v399_v50 = vadd.f32 %v398_v49, %v361_v43  ;;  %v3209_v51 = vpop.f32.mrb[5].mxu1 }
 0x399   :  { %v401_v52 = vpop.f32.mrb[6].mxu1 }
 0x39a   :  { %v402_v53 = vadd.f32 %v401_v52, %v362_v44  ;;  %v3210_v54 = vpop.f32.mrb[7].mxu1  ;;  %3219 = vmatprep.mubr.msk.f32.mxu0 %vm4419_vm8, %v399_v50 }
 0x39c   :  { %3220 = vmatmul.mubr.msk.f32.vlgmr.msra.gmra.mrb[8].mxu0 %vm4419_vm8, %v402_v53 }
 0x39d   :  { %3467 = vmatpush3.bf16.msra.mxu0 %v3691_v16 }
 0x39e   :  { %3468 = vmatprep.subr.bf16.mxu0 %v3692_v21 }
 0x46f   :  { %v3221_v56 = vpop.f32.mrb[8].mxu0 }
 0x470   :  { %v493_v57 = vmul.f32 %v3221_v56, %v350_v32  ;;  %v483_v58 = vpop.f32.mrb[9].mxu0 }
 0x471   :  { %v492_v59 = vmul.f32 %v483_v58, %v349_v30 }
 0x472   :  { %v499_v60 = vadd.f32 %v2984_v55, %v493_v57 }
 0x473   :  { %v498_v61 = vadd.f32 %v2984_v55, %v492_v59 }
 0x474   :  { %3629 = vtanh.f32 %v499_v60 }
 0x475   :  { %3631 = vtanh.f32 %v498_v61  ;;  %v503_v62 = vpack.c.bf16 %v499_v60, %v498_v61  ;;  %v3574_v63 = vpack.i.bf16 %v499_v60, %v498_v61 }
 0x477   :  { %506 = vperm.xlu0 %3573, %v503_v62   ;;  %3575 = vperm.xlu1 %3572, %v3574_v63  }
 0x47e   :  { %v3630_v0 = vpop.eup %3629 }
 0x47f   :  { %v3632_v1 = vpop.eup %3631  ;;  %835 = vperm.xlu0 %3573, %v3630_v0  }
 0x480   :  { %830 = vperm.xlu1 %3572, %v3632_v1   ;;  %v1101_v1 = vld [vmem:[%s4409_s5 + $0x10] sm:$0xff] }
 0x481   :  { %v3480_v12 = vpack.c.bf16 %v1102_v11, %v1101_v1 }
 0x4f6   :  { %v507_v14 = vpop.permute.xlu0 %506  ;;  %v3576_v23 = vpop.permute.xlu1 %3575 }
 0x4f7   :  { %v509_v15 = vmul.bf16 %v507_v14, %v3884_v13  ;;  %v3578_v25 = vunpack.i.h.bf16 %v3576_v23  ;;  %v3577_v26 = vunpack.i.l.bf16 %v3576_v23  ;;  %v1103_v14 = vld [vmem:[%s4409_s5 + $0x20] sm:$0xff] }
 0x4f9   :  { %3223 = vmatpush3.bf16.msra.mxu1 %v509_v15  ;;  %v1104_v15 = vld [vmem:[%s4409_s5 + $0x28] sm:$0xff] }
 0x4fa   :  { %v3484_v23 = vpack.c.bf16 %v1104_v15, %v1103_v14 }
 0x4fc   :  { %3225 = vmatmul.mubr.msk.bf16.vlgmr.msra.gmra.mrb[8].mxu1 %vm158_vm1, %v3689_v17 }
 0x4fd   :  { %3244 = vmatprep.mubr.msk.f32.mxu1 %vm64_vm3, %v3794_v6 }
 0x4fe   :  { %v836_v56 = vpop.permute.xlu0 %835 }
 0x4ff   :  { %v831_v55 = vpop.permute.xlu1 %830  ;;  %v839_v58 = vmul.f32 %v836_v56, %v303_v40  ;;  %v1099_v40 = vld [vmem:[%s4409_s5] sm:$0xff] }
 0x500   :  { %v838_v59 = vmul.f32 %v831_v55, %v302_v41  ;;  %v1100_v41 = vld [vmem:[%s4409_s5 + $0x8] sm:$0xff] }
 0x501   :  { %v3476_v3 = vpack.c.bf16 %v1100_v41, %v1099_v40 }
 0x5cf   :  { %v547_v24 = vpop.f32.mrb[8].mxu1 }
 0x5d0   :  { %v558_v27 = vrot.slane %v547_v24, %v3895_v22  ;;  %v3226_v28 = vpop.f32.mrb[9].mxu1  ;;  %v1105_v24 = vld [vmem:[%s4409_s5 + $0x30] sm:$0xff] }
 0x5d1   :  { %v550_v29 = vpop.f32.mrb[10].mxu1 }
 0x5d2   :  { %vm570_vm13 = vcmp.gt.f32.partialorder %v558_v27, %v3578_v25  ;;  %vm571_vm14 = vcmp.eq.f32.partialorder %v558_v27, %v3577_v26  ;;  %vm572_vm15 = vcmp.eq.f32.partialorder %v558_v27, %v3578_v25  ;;  %v3227_v30 = vpop.f32.mrb[11].mxu1  ;;  %vm569_vm4 = vcmp.gt.f32.partialorder %v558_v27, %v3577_v26  ;;  %v1106_v25 = vld [vmem:[%s4409_s5 + $0x38] sm:$0xff]  ;;  %s3694_s5 = smov 127  }
 0x5d3   :  { %vm575_vm5 = vmand %vm571_vm14, %vm573_vm11  ;;  %v3488_v26 = vpack.c.bf16 %v1106_v25, %v1105_v24 }
 0x5d4   :  { %vm576_vm6 = vmand %vm572_vm15, %vm574_vm12 }
 0x5d5   :  { %vm578_vm7 = vmor %vm570_vm13, %vm576_vm6 }
 0x5d6   :  { %v2987_v31 = vsel %vm578_vm7, 1.0, %v3686_v2  ;;  %vm577_vm9 = vmor %vm569_vm4, %vm575_vm5  ;;  %vm4418_vm5 = vcmask 523264  }
 0x5d7   :  { %v584_v32 = vmul.f32 %v3818_v18, %v2987_v31  ;;  %v2986_v35 = vsel %vm577_vm9, 1.0, %v3686_v2 }
 0x5d8   :  { %v583_v36 = vmul.f32 %v2986_v35, %v3820_v19 }
 0x5da   :  { %3232 = vmatprep.mubr.msk.f32.mxu0 %vm158_vm1, %v583_v36 }
 0x5db   :  { %3233 = vmatmul.mubr.msk.f32.vlgmr.msra.gmra.mrb[10].mxu0 %vm158_vm1, %v584_v32 }
 0x5dc   :  { %3469 = vmatpush3.bf16.msra.mxu0 %v3691_v16  ;;  %3239 = vmatprep.mubr.msk.f32.mxu0 %vm3687_vm0, %v3686_v2 }
 0x5dd   :  { %3470 = vmatprep.subr.bf16.mxu0 %v3692_v21 }
 0x5df   :  { %3240 = vmatmul.mubr.msk.f32.vlgmr.msra.gmra.mrb[12].mxu0 %vm158_vm1, %v3789_v5 }
 0x5e0   :  { %3251 = vmatprep.mubr.msk.f32.mxu0 %vm3687_vm0, %v3686_v2 }
 0x6ae   :  { %v3234_v39 = vpop.f32.mrb[10].mxu0 }
 0x6af   :  { %v657_v42 = vpop.f32.mrb[11].mxu0 }
 0x6b2   :  { %v734_v43 = vpop.f32.mrb[12].mxu0 }
 0x6b3   :  { %v738_v44 = vmul.f32 0.5, %v734_v43  ;;  %v3241_v45 = vpop.f32.mrb[13].mxu0 }
 0x6b5   :  { %v739_v48 = vceil.f32 %v738_v44 }
 0x6b7   :  { %3242 = vmatprep.subr.msk.mxu1 %vm71_vm2, %v739_v48 }
 0x6b8   :  { %3243 = vmatpush3.msk.msra.mxu1 %vm71_vm2, %v739_v48 }
 0x6b9   :  { %3245 = vmatmul.mubr.msk.f32.vlgmr.msra.gmra.mrb[12].mxu1 %vm64_vm3, %v3805_v7  ;;  %3473 = vmatprep.subr.bf16.mxu1 %v3692_v21 }
 0x6ba   :  { %3258 = vmatprep.mubr.msk.f32.mxu1 %vm3687_vm0, %v3686_v2 }
 0x78c   :  { %v3246_v49 = vpop.f32.mrb[12].mxu1 }
 0x78d   :  { %vm819_vm10 = vcmp.lt.f32.partialorder %v3234_v39, %v3246_v49  ;;  %v809_v50 = vpop.f32.mrb[13].mxu1 }
 0x78e   :  { %v3930_v51 = vsel %vm819_vm10, 1.0, %v3686_v2  ;;  %vm818_vm13 = vcmp.lt.f32.partialorder %v657_v42, %v809_v50 }
 0x78f   :  { %v3933_v52 = vsel %vm818_vm13, 1.0, %v3686_v2  ;;  %vm3935_vm14 = vmpackc.low %vm819_vm10, %vm818_vm13  ;;  %vm4420_vm6 = vcmp.gt.f32.partialorder %v3930_v51, 0.0 }
 0x790   :  { %v3579_v54 = vpack.i.bf16 %v3930_v51, %v3933_v52  ;;  %3472 = vmatpush3.bf16.msk.msra.mxu0 %vm3935_vm14, %v3691_v16  ;;  %vm4421_vm7 = vcmp.gt.f32.partialorder %v3933_v52, 0.0 }
 0x791   :  { %3261 = vmatprep.subr.bf16.mxu0 %v3686_v2 }
 0x792   :  { %3580 = vperm.xlu1 %3572, %v3579_v54  }
 0x793   :  { %3252 = vmatmul.mubr.msk.f32.vlgmr.msra.gmra.mrb[14].mxu0 %vm158_vm1, %v3789_v5 }
 0x794   :  { %3263 = vmatprep.mubr.msk.bf16.mxu0 %vm3687_vm0, %v3686_v2 }
 0x811   :  { %v3581_v57 = vpop.permute.xlu1 %3580 }
 0x812   :  { %v3583_v60 = vunpack.i.h.bf16 %v3581_v57  ;;  %v3582_v61 = vunpack.i.l.bf16 %v3581_v57 }
 0x814   :  { %v3953_v62 = vmul.f32 %v3583_v60, %v839_v58  ;;  %v3955_v63 = vmul.f32 %v3582_v61, %v838_v59  ;;  %v4017_v59 = vpack.i.bf16 %v3832_v34, %v3827_v33  ;;  %v4021_v60 = vpack.i.bf16 %v3862_v47, %v3857_v46 }
 0x816   :  { %v3474_v0 = vpack.c.bf16 %v3953_v62, %v3955_v63 }
 0x818   :  { %3475 = vmatpush3.bf16.msra.mxu1 %v3474_v0  ;;  %3262 = vmatpush3.bf16.msra.mxu0 %v3474_v0 }
 0x819   :  { %3286 = vmatprep.subr.bf16.mxu0 %v3686_v2  ;;  %3477 = vmatprep.subr.bf16.mxu1 %v3476_v3 }
 0x81b   :  { %3264 = vmatmul.mubr.msk.bf16.vlgmr.msra.gmra.mrb[16].mxu0 %vm158_vm1, %v3779_v4  ;;  %3259 = vmatmul.mubr.msk.f32.vlgmr.msra.gmra.mrb[14].mxu1 %vm158_vm1, %v3789_v5 }
 0x81c   :  { %3287 = vmatpush3.bf16.msk.msra.mxu0 %vm3935_vm14, %v3691_v16  ;;  %3288 = vmatprep.mubr.msk.bf16.mxu0 %vm3687_vm0, %v3686_v2 }
 0x81d   :  { %3292 = vmatprep.subr.bf16.mxu0 %v3686_v2  ;;  %3479 = vmatpush3.bf16.msra.mxu1 %v3476_v3 }
 0x81e   :  { %3481 = vmatprep.subr.bf16.mxu1 %v3480_v12 }
 0x821   :  { %3483 = vmatpush3.bf16.msra.mxu1 %v3480_v12 }
 0x822   :  { %3485 = vmatprep.subr.bf16.mxu1 %v3484_v23 }
 0x823   :  { %3289 = vmatmul.mubr.msk.bf16.vlgmr.msra.gmra.mrb[20].mxu0 %vm158_vm1, %v3779_v4 }
 0x824   :  { %3294 = vmatprep.mubr.msk.bf16.mxu0 %vm3687_vm0, %v3686_v2 }
 0x825   :  { %3487 = vmatpush3.bf16.msra.mxu1 %v3484_v23 }
 0x826   :  { %3489 = vmatprep.subr.bf16.mxu1 %v3488_v26 }
 0x829   :  { %3491 = vmatpush3.bf16.msra.mxu1 %v3488_v26 }
 0x866   :  { %v3974_v37 = vpop.f32.mrb[14].mxu0 }
 0x867   :  { %v3253_v38 = vpop.f32.mrb[15].mxu0 }
 0x868   :  { %v3001_v38 = vld [vmem:[%s4411_s7 + $0x1] ss:$0 sm:$0xff] }
 0x8ee   :  { %v1081_v27 = vpop.f32.mrb[16].mxu0  ;;  %v4007_v53 = vpop.f32.mrb[14].mxu1 }
 0x8ef   :  { %1090 = vrot.lane.b32.xlu0 %v1081_v27, %s3693_s27  ;;  %v3265_v28 = vpop.f32.mrb[17].mxu0  ;;  %v3260_v54 = vpop.f32.mrb[15].mxu1 }
 0x8f0   :  { %v1084_v29 = vpop.f32.mrb[18].mxu0 }
 0x8f1   :  { %1092 = vrot.lane.b32.xlu1 %v1084_v29, %s3693_s27  ;;  %v3266_v30 = vpop.f32.mrb[19].mxu0  ;;  %v1565_v29 = vmul.f32 0.5, %v3974_v37 }
 0x8f6   :  { %v1230_v31 = vpop.f32.mrb[20].mxu0 }
 0x8f7   :  { %v1231_v32 = vadd.f32 1.0, %v1230_v31  ;;  %v3290_v35 = vpop.f32.mrb[21].mxu0 }
 0x8f8   :  { %v1233_v36 = vpop.f32.mrb[22].mxu0 }
 0x8f9   :  { %v1237_v39 = vmul.f32 %v3933_v52, %v1231_v32  ;;  %v1234_v42 = vadd.f32 1.0, %v1233_v36  ;;  %v3291_v43 = vpop.f32.mrb[23].mxu0 }
 0x8fb   :  { %3633 = vrsqrt.f32 %v1237_v39  ;;  %v1238_v44 = vmul.f32 %v3930_v51, %v1234_v42  ;;  %vm1239_vm15 = vcmp.gt.f32.partialorder %v1237_v39, 0.0  ;;  %v1566_v39 = vceil.f32 %v1565_v29  ;;  %v3010_v42 = vld [vmem:[%s4413_s9 + $0x1] ss:$0 sm:$0xff] }
 0x8fd   :  { %3635 = vrsqrt.f32 %v1238_v44  ;;  %vm1240_vm4 = vcmp.gt.f32.partialorder %v1238_v44, 0.0 }
 0x905   :  { %v3634_v45 = vpop.eup %3633 }
 0x906   :  { %v4004_v48 = vsel %vm1239_vm15, %v3634_v45, 0.0 }
 0x907   :  { %v3636_v49 = vpop.eup %3635  ;;  %1247 = vperm.xlu0 %3573, %v4004_v48  }
 0x908   :  { %v1244_v50 = vsel %vm1240_vm4, %v3636_v49, 0.0 }
 0x909   :  { %1252 = vperm.xlu1 %3572, %v1244_v50  }
 0x90b   :  { %3585 = vrot.lane.b32.xlu0 %v4017_v59, %s3694_s5 }
 0x90d   :  { %3590 = vrot.lane.b32.xlu1 %v4021_v60, %s3694_s5 }
 0x961   :  { %v1091_v55 = vpop.permute.xlu0 %1090 }
 0x962   :  { %v1096_v56 = vsel %vm4419_vm8, %v3955_v63, %v1091_v55 }
 0x963   :  { %v1093_v57 = vpop.permute.xlu1 %1092  ;;  %3283 = vmatprep.mubr.msk.f32.mxu1 %vm4418_vm5, %v1096_v56 }
 0x964   :  { %v1097_v58 = vsel %vm4419_vm8, %v3953_v62, %v1093_v57 }
 0x965   :  { %3284 = vmatmul.mubr.msk.f32.vlgmr.msra.gmra.mrb[16].mxu1 %vm4418_vm5, %v1097_v58 }
 0x986   :  { %v1248_v61 = vpop.permute.xlu0 %1247 }
 0x988   :  { %v1253_v0 = vpop.permute.xlu1 %1252 }
 0x98a   :  { %v3586_v34 = vpop.permute.xlu0 %3585 }
 0x98b   :  { %v3588_v46 = vunpack.i.h.bf16 %v3586_v34  ;;  %v3587_v47 = vunpack.i.l.bf16 %v3586_v34 }
 0x98c   :  { %v3591_v3 = vpop.permute.xlu1 %3590 }
 0x98d   :  { %v3593_v12 = vunpack.i.h.bf16 %v3591_v3  ;;  %v3592_v14 = vunpack.i.l.bf16 %v3591_v3  ;;  %v3492_v23 = vpack.c.bf16 %v3588_v46, %v3587_v47 }
 0x98f   :  { %v3496_v25 = vpack.c.bf16 %v3593_v12, %v3592_v14  ;;  %3493 = vmatprep.subr.bf16.mxu1 %v3492_v23 }
 0x990   :  { %3495 = vmatpush3.bf16.msra.mxu1 %v3492_v23 }
 0x991   :  { %3497 = vmatprep.subr.bf16.mxu1 %v3496_v25 }
 0x994   :  { %3499 = vmatpush3.bf16.msra.mxu1 %v3496_v25 }
 0x995   :  { %3500 = vmatprep.subr.bf16.mxu1 %v3691_v16 }
 0xa38   :  { %v3285_v40 = vpop.f32.mrb[16].mxu1 }
 0xa39   :  { %v4028_v41 = vadd.f32 %v3285_v40, %v3001_v38  ;;  %v1184_v33 = vpop.f32.mrb[17].mxu1 }
 0xa3a   :  { %v4030_v1 = vadd.f32 %v3001_v38, %v1184_v33 }
 0xa3b   :  { %v1194_v11 = vmax.f32 %v4028_v41, 0.0 }
 0xa3c   :  { %v1193_v15 = vmax.f32 %v4030_v1, 0.0  ;;  %v1925_v1 = vld [vmem:[%s4410_s6] sm:$0xff] }
 0xa3d   :  { %v1256_v24 = vmul.f32 %v1253_v0, %v1194_v11 }
 0xa3e   :  { %v1255_v26 = vmul.f32 %v1248_v61, %v1193_v15 }
 0xa40   :  { %v1257_v27 = vpack.c.bf16 %v1256_v24, %v1255_v26 }
 0xa42   :  { %3293 = vmatpush3.bf16.msra.mxu0 %v1257_v27 }
 0xa43   :  { %3309 = vmatprep.subr.bf16.mxu0 %v3686_v2 }
 0xa45   :  { %3295 = vmatmul.mubr.msk.bf16.vlgmr.msra.gmra.mrb[24].mxu0 %vm158_vm1, %v3779_v4 }
 0xa46   :  { %3311 = vmatprep.mubr.msk.bf16.mxu0 %vm3687_vm0, %v3686_v2 }
 0xb18   :  { %v1292_v28 = vpop.f32.mrb[24].mxu0 }
 0xb19   :  { %v1293_v30 = vadd.f32 %v1292_v28, %v1255_v26  ;;  %v3296_v31 = vpop.f32.mrb[25].mxu0 }
 0xb1a   :  { %v1295_v32 = vpop.f32.mrb[26].mxu0 }
 0xb1b   :  { %v1296_v35 = vadd.f32 %v1295_v32, %v1256_v24  ;;  %v3297_v36 = vpop.f32.mrb[27].mxu0  ;;  %3306 = vmatprep.mubr.msk.f32.mxu1 %vm4419_vm8, %v1293_v30 }
 0xb1d   :  { %3307 = vmatmul.mubr.msk.f32.vlgmr.msra.gmra.mrb[18].mxu1 %vm4419_vm8, %v1296_v35 }
 0xb1e   :  { %3501 = vmatpush3.bf16.msra.mxu1 %v3691_v16 }
 0xb1f   :  { %3322 = vmatprep.subr.msk.mxu1 %vm71_vm2, %v1566_v39 }
 0xbf0   :  { %v3308_v43 = vpop.f32.mrb[18].mxu1 }
 0xbf1   :  { %v1398_v44 = vmul.f32 %v3308_v43, %v1244_v50  ;;  %v1388_v45 = vpop.f32.mrb[19].mxu1 }
 0xbf2   :  { %v1397_v49 = vmul.f32 %v1388_v45, %v4004_v48 }
 0xbf3   :  { %v1404_v54 = vadd.f32 %v3010_v42, %v1398_v44 }
 0xbf4   :  { %v1403_v55 = vadd.f32 %v3010_v42, %v1397_v49 }
 0xbf5   :  { %v1406_v56 = vsel %vm4420_vm6, %v1404_v54, -1e+30  ;;  %3637 = vtanh.f32 %v1404_v54 }
 0xbf6   :  { %v1405_v57 = vsel %vm4421_vm7, %v1403_v55, -1e+30  ;;  %3639 = vtanh.f32 %v1403_v55 }
 0xbf7   :  { %v1407_v58 = vpack.c.bf16 %v1406_v56, %v1405_v57  ;;  %v3594_v50 = vpack.i.bf16 %v1406_v56, %v1405_v57 }
 0xbf9   :  { %1410 = vperm.xlu0 %3573, %v1407_v58   ;;  %3595 = vperm.xlu1 %3572, %v3594_v50   ;;  %v1928_v58 = vld [vmem:[%s4410_s6 + $0x18] sm:$0xff] }
 0xbff   :  { %v3638_v61 = vpop.eup %3637 }
 0xc00   :  { %v3640_v48 = vpop.eup %3639  ;;  %1662 = vperm.xlu1 %3572, %v3638_v61   ;;  %v1929_v61 = vld [vmem:[%s4410_s6 + $0x20] sm:$0xff] }
 0xc01   :  { %1657 = vperm.xlu0 %3573, %v3640_v48   ;;  %v1930_v48 = vld [vmem:[%s4410_s6 + $0x28] sm:$0xff] }
 0xc78   :  { %v1411_v0 = vpop.permute.xlu0 %1410  ;;  %v3596_v40 = vpop.permute.xlu1 %3595 }
 0xc79   :  { %v1413_v38 = vmul.bf16 %v1411_v0, %v3884_v13  ;;  %v3598_v34 = vunpack.i.h.bf16 %v3596_v40  ;;  %v3597_v46 = vunpack.i.l.bf16 %v3596_v40  ;;  %v3516_v0 = vpack.c.bf16 %v1930_v48, %v1929_v61  ;;  %v1932_v40 = vld [vmem:[%s4410_s6 + $0x38] sm:$0xff] }
 0xc7b   :  { %3310 = vmatpush3.bf16.msra.mxu0 %v1413_v38  ;;  %v1931_v38 = vld [vmem:[%s4410_s6 + $0x30] sm:$0xff] }
 0xc7c   :  { %3502 = vmatprep.subr.bf16.mxu0 %v3692_v21 }
 0xc7e   :  { %3312 = vmatmul.mubr.msk.bf16.vlgmr.msra.gmra.mrb[28].mxu0 %vm158_vm1, %v3689_v17 }
 0xc7f   :  { %3331 = vmatprep.mubr.msk.f32.mxu0 %vm3687_vm0, %v3686_v2 }
 0xc80   :  { %v1658_v36 = vpop.permute.xlu0 %1657 }
 0xc81   :  { %v1665_v43 = vmul.f32 %v1658_v36, %v1193_v15  ;;  %v1927_v15 = vld [vmem:[%s4410_s6 + $0x10] sm:$0xff] }
 0xc82   :  { %v3512_v50 = vpack.c.bf16 %v1928_v58, %v1927_v15 }
 0xd51   :  { %v1448_v33 = vpop.f32.mrb[28].mxu0 }
 0xd52   :  { %v1459_v47 = vrot.slane %v1448_v33, %v3895_v22  ;;  %v3313_v3 = vpop.f32.mrb[29].mxu0  ;;  %v3520_v33 = vpack.c.bf16 %v1932_v40, %v1931_v38 }
 0xd53   :  { %v1451_v12 = vpop.f32.mrb[30].mxu0 }
 0xd54   :  { %vm1471_vm9 = vcmp.gt.f32.partialorder %v1459_v47, %v3598_v34  ;;  %vm1472_vm10 = vcmp.eq.f32.partialorder %v1459_v47, %v3597_v46  ;;  %vm1473_vm13 = vcmp.eq.f32.partialorder %v1459_v47, %v3598_v34  ;;  %v3314_v14 = vpop.f32.mrb[31].mxu0  ;;  %vm1470_vm14 = vcmp.gt.f32.partialorder %v1459_v47, %v3597_v46 }
 0xd55   :  { %vm1474_vm15 = vmand %vm1472_vm10, %vm573_vm11 }
 0xd56   :  { %vm1475_vm4 = vmand %vm1473_vm13, %vm574_vm12 }
 0xd57   :  { %vm1477_vm5 = vmor %vm1471_vm9, %vm1475_vm4  ;;  %vm4428_vm4 = vcmask 261120  }
 0xd58   :  { %v3013_v23 = vsel %vm1477_vm5, 1.0, %v3686_v2  ;;  %vm1476_vm8 = vmor %vm1470_vm14, %vm1474_vm15 }
 0xd59   :  { %v1483_v24 = vmul.f32 %v3818_v18, %v3013_v23  ;;  %v3012_v25 = vsel %vm1476_vm8, 1.0, %v3686_v2 }
 0xd5a   :  { %v1482_v26 = vmul.f32 %v3012_v25, %v3820_v19 }
 0xd5c   :  { %3319 = vmatprep.mubr.msk.f32.mxu1 %vm158_vm1, %v1482_v26 }
 0xd5d   :  { %3320 = vmatmul.mubr.msk.f32.vlgmr.msra.gmra.mrb[20].mxu1 %vm158_vm1, %v1483_v24 }
 0xd5e   :  { %3323 = vmatpush3.msk.msra.mxu1 %vm71_vm2, %v1566_v39  ;;  %3324 = vmatprep.mubr.msk.f32.mxu1 %vm64_vm3, %v3794_v6  ;;  %v1663_v39 = vpop.permute.xlu1 %1662 }
 0xd5f   :  { %3505 = vmatprep.subr.bf16.mxu1 %v3692_v21  ;;  %v1666_v44 = vmul.f32 %v1663_v39, %v1194_v11  ;;  %v1926_v11 = vld [vmem:[%s4410_s6 + $0x8] sm:$0xff]  ;;  %s3695_s6 = smov 126  }
 0xd60   :  { %v3508_v57 = vpack.c.bf16 %v1926_v11, %v1925_v1 }
 0xd61   :  { %3325 = vmatmul.mubr.msk.f32.vlgmr.msra.gmra.mrb[22].mxu1 %vm64_vm3, %v3805_v7 }
 0xd62   :  { %3338 = vmatprep.mubr.msk.f32.mxu1 %vm3687_vm0, %v3686_v2 }
 0xe30   :  { %v3321_v27 = vpop.f32.mrb[20].mxu1 }
 0xe31   :  { %v1556_v28 = vpop.f32.mrb[21].mxu1 }
 0xe34   :  { %v3326_v29 = vpop.f32.mrb[22].mxu1 }
 0xe35   :  { %vm1646_vm8 = vcmp.lt.f32.partialorder %v3321_v27, %v3326_v29  ;;  %v1636_v30 = vpop.f32.mrb[23].mxu1 }
 0xe36   :  { %vm4088_vm5 = vmand %vm4420_vm6, %vm1646_vm8  ;;  %vm1645_vm9 = vcmp.lt.f32.partialorder %v1556_v28, %v1636_v30  ;;  %vm4429_vm8 = vcmask 523264  }
 0xe37   :  { %v4095_v6 = vsel %vm4088_vm5, 1.0, %v3686_v2  ;;  %vm4099_vm10 = vmand %vm4421_vm7, %vm1645_vm9 }
 0xe38   :  { %v4106_v32 = vsel %vm4099_vm10, 1.0, %v3686_v2  ;;  %vm3503_vm13 = vmpackc.low %vm4088_vm5, %vm4099_vm10 }
 0xe39   :  { %3504 = vmatpush3.bf16.msk.msra.mxu0 %vm3503_vm13, %v3691_v16  ;;  %v3599_v35 = vpack.i.bf16 %v4095_v6, %v4106_v32  ;;  %vm4430_vm5 = vmmov %vm4428_vm4 }
 0xe3a   :  { %3341 = vmatprep.subr.bf16.mxu0 %v3686_v2  ;;  %vm4431_vm9 = vmmov %vm4429_vm8 }
 0xe3b   :  { %3600 = vperm.xlu0 %3573, %v3599_v35   ;;  %vm4432_vm10 = vmmov %vm4428_vm4 }
 0xe3c   :  { %3332 = vmatmul.mubr.msk.f32.vlgmr.msra.gmra.mrb[32].mxu0 %vm158_vm1, %v3789_v5 }
 0xe3d   :  { %3343 = vmatprep.mubr.msk.bf16.mxu0 %vm3687_vm0, %v3686_v2 }
 0xeba   :  { %v3601_v42 = vpop.permute.xlu0 %3600 }
 0xebb   :  { %v3603_v45 = vunpack.i.h.bf16 %v3601_v42  ;;  %v3602_v49 = vunpack.i.l.bf16 %v3601_v42 }
 0xebd   :  { %v4129_v54 = vmul.f32 %v3603_v45, %v1666_v44  ;;  %v4131_v55 = vmul.f32 %v3602_v49, %v1665_v43 }
 0xebf   :  { %v3506_v56 = vpack.c.bf16 %v4129_v54, %v4131_v55 }
 0xec1   :  { %3507 = vmatpush3.bf16.msra.mxu1 %v3506_v56  ;;  %3342 = vmatpush3.bf16.msra.mxu0 %v3506_v56  ;;  %v3026_v56 = vld [vmem:[%s4411_s7 + $0x2] ss:$0 sm:$0xff] }
 0xec2   :  { %3366 = vmatprep.subr.bf16.mxu0 %v3686_v2  ;;  %3509 = vmatprep.subr.bf16.mxu1 %v3508_v57 }
 0xec4   :  { %3344 = vmatmul.mubr.msk.bf16.vlgmr.msra.gmra.mrb[36].mxu0 %vm158_vm1, %v3779_v4  ;;  %3339 = vmatmul.mubr.msk.f32.vlgmr.msra.gmra.mrb[24].mxu1 %vm158_vm1, %v3789_v5 }
 0xec5   :  { %3367 = vmatpush3.bf16.msk.msra.mxu0 %vm3503_vm13, %v3691_v16  ;;  %3368 = vmatprep.mubr.msk.bf16.mxu0 %vm3687_vm0, %v3686_v2  ;;  %vm4433_vm13 = vmmov %vm4428_vm4 }
 0xec6   :  { %3372 = vmatprep.subr.bf16.mxu0 %v3686_v2  ;;  %3511 = vmatpush3.bf16.msra.mxu1 %v3508_v57 }
 0xec7   :  { %3513 = vmatprep.subr.bf16.mxu1 %v3512_v50 }
 0xeca   :  { %3515 = vmatpush3.bf16.msra.mxu1 %v3512_v50 }
 0xecb   :  { %3517 = vmatprep.subr.bf16.mxu1 %v3516_v0 }
 0xecc   :  { %3369 = vmatmul.mubr.msk.bf16.vlgmr.msra.gmra.mrb[40].mxu0 %vm158_vm1, %v3779_v4 }
 0xecd   :  { %3374 = vmatprep.mubr.msk.bf16.mxu0 %vm3687_vm0, %v3686_v2 }
 0xece   :  { %3519 = vmatpush3.bf16.msra.mxu1 %v3516_v0 }
 0xecf   :  { %3521 = vmatprep.subr.bf16.mxu1 %v3520_v33 }
 0xed2   :  { %3523 = vmatpush3.bf16.msra.mxu1 %v3520_v33 }
 0xf0f   :  { %v4153_v41 = vpop.f32.mrb[32].mxu0 }
 0xf10   :  { %v3333_v5 = vpop.f32.mrb[33].mxu0 }
 0xf97   :  { %v1907_v34 = vpop.f32.mrb[36].mxu0  ;;  %v4183_v35 = vpop.f32.mrb[24].mxu1 }
 0xf98   :  { %1916 = vrot.lane.b32.xlu1 %v1907_v34, %s3693_s27  ;;  %v3345_v46 = vpop.f32.mrb[37].mxu0  ;;  %v3340_v36 = vpop.f32.mrb[25].mxu1 }
 0xf99   :  { %v1910_v47 = vpop.f32.mrb[38].mxu0 }
 0xf9a   :  { %1918 = vrot.lane.b32.xlu0 %v1910_v47, %s3693_s27  ;;  %v3346_v3 = vpop.f32.mrb[39].mxu0 }
 0xf9b   :  { %v4213_v3 = vmul.f32 0.5, %v4153_v41 }
 0xf9f   :  { %v2055_v12 = vpop.f32.mrb[40].mxu0 }
 0xfa0   :  { %v2056_v14 = vadd.f32 1.0, %v2055_v12  ;;  %v3370_v23 = vpop.f32.mrb[41].mxu0 }
 0xfa1   :  { %v2058_v24 = vpop.f32.mrb[42].mxu0 }
 0xfa2   :  { %v2062_v25 = vmul.f32 %v4106_v32, %v2056_v14  ;;  %v2059_v26 = vadd.f32 1.0, %v2058_v24  ;;  %v3371_v27 = vpop.f32.mrb[43].mxu0 }
 0xfa4   :  { %3641 = vrsqrt.f32 %v2062_v25  ;;  %v2063_v28 = vmul.f32 %v4095_v6, %v2059_v26  ;;  %vm2064_vm14 = vcmp.gt.f32.partialorder %v2062_v25, 0.0  ;;  %v2387_v26 = vceil.f32 %v4213_v3  ;;  %v3661_v3 = vld [vmem:[%s4406_s2] sm:$0x3] }
 0xfa6   :  { %3643 = vrsqrt.f32 %v2063_v28  ;;  %vm2065_vm15 = vcmp.gt.f32.partialorder %v2063_v28, 0.0 }
 0xfae   :  { %v3642_v29 = vpop.eup %3641 }
 0xfaf   :  { %v2068_v30 = vsel %vm2064_vm14, %v3642_v29, 0.0  ;;  %vm1828_vm14 = vcmp.gt.f32.partialorder %v4095_v6, 0.0  ;;  %v2693_v6 = vld [vmem:[%s4414_s10] sm:$0xff] }
 0xfb0   :  { %v3644_v31 = vpop.eup %3643  ;;  %2072 = vperm.xlu1 %3572, %v2068_v30  }
 0xfb1   :  { %v2069_v7 = vsel %vm2065_vm15, %v3644_v31, 0.0  ;;  %vm1827_vm15 = vcmp.gt.f32.partialorder %v4106_v32, 0.0 }
 0xfb2   :  { %2077 = vperm.xlu0 %3573, %v2069_v7  }
 0xfb4   :  { %3605 = vrot.lane.b32.xlu1 %v4017_v59, %s3695_s6 }
 0xfb6   :  { %3610 = vrot.lane.b32.xlu0 %v4021_v60, %s3695_s6 }
0x100a   :  { %v1917_v39 = vpop.permute.xlu1 %1916 }
0x100b   :  { %v1922_v42 = vsel %vm4428_vm4, %v4131_v55, %v1917_v39 }
0x100c   :  { %v1919_v43 = vpop.permute.xlu0 %1918  ;;  %3363 = vmatprep.mubr.msk.f32.mxu1 %vm4429_vm8, %v1922_v42 }
0x100d   :  { %v1923_v44 = vsel %vm4430_vm5, %v4129_v54, %v1919_v43 }
0x100e   :  { %3364 = vmatmul.mubr.msk.f32.vlgmr.msra.gmra.mrb[26].mxu1 %vm4431_vm9, %v1923_v44 }
0x102f   :  { %v2073_v45 = vpop.permute.xlu1 %2072 }
0x1031   :  { %v2078_v49 = vpop.permute.xlu0 %2077 }
0x1033   :  { %v3606_v15 = vpop.permute.xlu1 %3605 }
0x1034   :  { %v3608_v58 = vunpack.i.h.bf16 %v3606_v15  ;;  %v3607_v50 = vunpack.i.l.bf16 %v3606_v15 }
0x1035   :  { %v3611_v61 = vpop.permute.xlu0 %3610 }
0x1036   :  { %v3613_v48 = vunpack.i.h.bf16 %v3611_v61  ;;  %v3612_v60 = vunpack.i.l.bf16 %v3611_v61  ;;  %v3524_v38 = vpack.c.bf16 %v3608_v58, %v3607_v50 }
0x1038   :  { %v3528_v33 = vpack.c.bf16 %v3613_v48, %v3612_v60  ;;  %3525 = vmatprep.subr.bf16.mxu1 %v3524_v38 }
0x1039   :  { %3527 = vmatpush3.bf16.msra.mxu1 %v3524_v38 }
0x103a   :  { %3529 = vmatprep.subr.bf16.mxu1 %v3528_v33 }
0x103d   :  { %3531 = vmatpush3.bf16.msra.mxu1 %v3528_v33 }
0x103e   :  { %3532 = vmatprep.subr.bf16.mxu1 %v3691_v16 }
0x10e1   :  { %v3365_v5 = vpop.f32.mrb[26].mxu1 }
0x10e2   :  { %v4196_v1 = vadd.f32 %v3365_v5, %v3026_v56  ;;  %v2009_v11 = vpop.f32.mrb[27].mxu1 }
0x10e3   :  { %v4198_v57 = vadd.f32 %v3026_v56, %v2009_v11 }
0x10e4   :  { %v2019_v59 = vmax.f32 %v4196_v1, 0.0 }
0x10e5   :  { %v2018_v0 = vmax.f32 %v4198_v57, 0.0 }
0x10e6   :  { %v2081_v40 = vmul.f32 %v2078_v49, %v2019_v59  ;;  %v992_v49 = vmax.f32 %v3974_v37, 1.0 }
0x10e7   :  { %v2080_v34 = vmul.f32 %v2073_v45, %v2018_v0 }
0x10e9   :  { %v2082_v46 = vpack.c.bf16 %v2081_v40, %v2080_v34 }
0x10eb   :  { %3373 = vmatpush3.bf16.msra.mxu0 %v2082_v46 }
0x10ec   :  { %3389 = vmatprep.subr.bf16.mxu0 %v3686_v2 }
0x10ee   :  { %3375 = vmatmul.mubr.msk.bf16.vlgmr.msra.gmra.mrb[44].mxu0 %vm158_vm1, %v3779_v4  ;;  %v3035_v4 = vld [vmem:[%s4413_s9 + $0x2] ss:$0 sm:$0xff] }
0x10ef   :  { %3391 = vmatprep.mubr.msk.bf16.mxu0 %vm3687_vm0, %v3686_v2 }
0x11c1   :  { %v2117_v47 = vpop.f32.mrb[44].mxu0 }
0x11c2   :  { %v2118_v12 = vadd.f32 %v2117_v47, %v2080_v34  ;;  %v3376_v14 = vpop.f32.mrb[45].mxu0 }
0x11c3   :  { %v2120_v23 = vpop.f32.mrb[46].mxu0 }
0x11c4   :  { %v2121_v24 = vadd.f32 %v2120_v23, %v2081_v40  ;;  %v3377_v25 = vpop.f32.mrb[47].mxu0  ;;  %3386 = vmatprep.mubr.msk.f32.mxu1 %vm4432_vm10, %v2118_v12  ;;  %v1819_v12 = vmax.f32 %v4153_v41, 1.0 }
0x11c6   :  { %3387 = vmatmul.mubr.msk.f32.vlgmr.msra.gmra.mrb[28].mxu1 %vm4433_vm13, %v2121_v24 }
0x11c7   :  { %3533 = vmatpush3.bf16.msra.mxu1 %v3691_v16 }
0x11c8   :  { %3402 = vmatprep.subr.msk.mxu1 %vm71_vm2, %v2387_v26 }
0x1299   :  { %v3388_v27 = vpop.f32.mrb[28].mxu1 }
0x129a   :  { %v2219_v28 = vmul.f32 %v3388_v27, %v2069_v7  ;;  %v2209_v29 = vpop.f32.mrb[29].mxu1 }
0x129b   :  { %v2218_v31 = vmul.f32 %v2209_v29, %v2068_v30 }
0x129c   :  { %v2225_v36 = vadd.f32 %v3035_v4, %v2219_v28 }
0x129d   :  { %v2224_v39 = vadd.f32 %v3035_v4, %v2218_v31 }
0x129e   :  { %v2227_v42 = vsel %vm1828_vm14, %v2225_v36, -1e+30  ;;  %3645 = vtanh.f32 %v2225_v36 }
0x129f   :  { %v2226_v43 = vsel %vm1827_vm15, %v2224_v39, -1e+30  ;;  %3647 = vtanh.f32 %v2224_v39 }
0x12a0   :  { %v2228_v44 = vpack.c.bf16 %v2227_v42, %v2226_v43  ;;  %v3614_v45 = vpack.i.bf16 %v2227_v42, %v2226_v43 }
0x12a2   :  { %2231 = vperm.xlu1 %3572, %v2228_v44   ;;  %3615 = vperm.xlu0 %3573, %v3614_v45   ;;  %v1830_v45 = vsel %vm1828_vm14, 1, %v3690_v20 }
0x12a8   :  { %v3646_v7 = vpop.eup %3645 }
0x12a9   :  { %v3648_v30 = vpop.eup %3647  ;;  %2483 = vperm.xlu0 %3573, %v3646_v7  }
0x12aa   :  { %2478 = vperm.xlu1 %3572, %v3648_v30  }
0x12ad   :  { %995 = vperm.xlu0 %3573, %v992_v49   ;;  %v2694_v49 = vld [vmem:[%s4414_s10 + $0x8] sm:$0xff] }
0x1321   :  { %v2232_v56 = vpop.permute.xlu1 %2231  ;;  %v3616_v11 = vpop.permute.xlu0 %3615 }
0x1322   :  { %v2234_v5 = vmul.bf16 %v2232_v56, %v3884_v13  ;;  %v3618_v58 = vunpack.i.h.bf16 %v3616_v11  ;;  %v3617_v50 = vunpack.i.l.bf16 %v3616_v11  ;;  %v3541_v56 = vpack.c.bf16 %v2694_v49, %v2693_v6  ;;  %v2698_v11 = vld [vmem:[%s4414_s10 + $0x28] sm:$0xff] }
0x1324   :  { %3390 = vmatpush3.bf16.msra.mxu0 %v2234_v5  ;;  %v2697_v5 = vld [vmem:[%s4414_s10 + $0x20] sm:$0xff] }
0x1325   :  { %3534 = vmatprep.subr.bf16.mxu0 %v3692_v21 }
0x1327   :  { %3392 = vmatmul.mubr.msk.bf16.vlgmr.msra.gmra.mrb[48].mxu0 %vm158_vm1, %v3689_v17 }
0x1328   :  { %3411 = vmatprep.mubr.msk.f32.mxu0 %vm3687_vm0, %v3686_v2 }
0x1329   :  { %v2479_v25 = vpop.permute.xlu1 %2478 }
0x13fa   :  { %v2269_v15 = vpop.f32.mrb[48].mxu0 }
0x13fb   :  { %v2280_v61 = vrot.slane %v2269_v15, %v3895_v22  ;;  %v3393_v48 = vpop.f32.mrb[49].mxu0  ;;  %v3547_v15 = vpack.c.bf16 %v2698_v11, %v2697_v5 }
0x13fc   :  { %v2272_v60 = vpop.f32.mrb[50].mxu0 }
0x13fd   :  { %vm2292_vm4 = vcmp.gt.f32.partialorder %v2280_v61, %v3618_v58  ;;  %vm2293_vm8 = vcmp.eq.f32.partialorder %v2280_v61, %v3617_v50  ;;  %vm2294_vm5 = vcmp.eq.f32.partialorder %v2280_v61, %v3618_v58  ;;  %v3394_v13 = vpop.f32.mrb[51].mxu0  ;;  %vm2291_vm9 = vcmp.gt.f32.partialorder %v2280_v61, %v3617_v50  ;;  %v2699_v58 = vld [vmem:[%s4414_s10 + $0x30] sm:$0xff]  ;;  %v2700_v50 = vld [vmem:[%s4414_s10 + $0x38] sm:$0xff]  ;;  %v2780_v60 = vld [vmem:[%s4415_s11] sm:$0xff] }
0x13fe   :  { %vm2295_vm10 = vmand %vm2293_vm8, %vm573_vm11  ;;  %v3550_v48 = vpack.c.bf16 %v2700_v50, %v2699_v58  ;;  %v2781_v13 = vld [vmem:[%s4415_s11 + $0x8] sm:$0xff] }
0x13ff   :  { %vm2296_vm13 = vmand %vm2294_vm5, %vm574_vm12  ;;  %vm1028_vm5 = vcmp.gt.f32.partialorder %v3974_v37, 0.0 }
0x1400   :  { %vm2298_vm6 = vmor %vm2292_vm4, %vm2296_vm13  ;;  %vm4434_vm4 = vcmp.gt.f32.partialorder %v3933_v52, 0.0  ;;  %v1029_v24 = vsel %vm1028_vm5, 1, %v3690_v20  ;;  %v2486_v52 = vmul.f32 %v2479_v25, %v2018_v0  ;;  %vm1855_vm13 = vcmp.gt.f32.partialorder %v4153_v41, 0.0  ;;  %v2695_v41 = vld [vmem:[%s4414_s10 + $0x10] sm:$0xff] }
0x1401   :  { %v3038_v17 = vsel %vm2298_vm6, 1.0, %v3686_v2  ;;  %vm2297_vm7 = vmor %vm2291_vm9, %vm2295_vm10  ;;  %v1002_v14 = vsel %vm4434_vm4, 1, %v3690_v20  ;;  %vm4435_vm9 = vcmp.gt.f32.partialorder %v3930_v51, 0.0  ;;  %v1856_v30 = vsel %vm1855_vm13, 1, %v3690_v20 }
0x1402   :  { %v2304_v22 = vmul.f32 %v3818_v18, %v3038_v17  ;;  %v3037_v38 = vsel %vm2297_vm7, 1.0, %v3686_v2  ;;  %v3660_v18 = vld [vmem:[%s4407_s3 + $0x8] sm:$0xff]  ;;  %v1003_v44 = vsel %vm4435_vm9, 1, %v3690_v20  ;;  %v3553_v17 = vpack.c.bf16 %v2781_v13, %v2780_v60 }
0x1403   :  { %v2303_v40 = vmul.f32 %v3037_v38, %v3820_v19  ;;  %vm1036_vm13 = vcmask 1041409  }
0x1405   :  { %3399 = vmatprep.mubr.msk.f32.mxu1 %vm158_vm1, %v2303_v40 }
0x1406   :  { %3400 = vmatmul.mubr.msk.f32.vlgmr.msra.gmra.mrb[30].mxu1 %vm158_vm1, %v2304_v22 }
0x1407   :  { %3403 = vmatpush3.msk.msra.mxu1 %vm71_vm2, %v2387_v26  ;;  %3404 = vmatprep.mubr.msk.f32.mxu1 %vm64_vm3, %v3659_v8  ;;  %v2484_v26 = vpop.permute.xlu0 %2483 }
0x1408   :  { %3537 = vmatprep.subr.bf16.mxu1 %v3692_v21  ;;  %v2487_v32 = vmul.f32 %v2484_v26, %v2019_v59 }
0x140a   :  { %3405 = vmatmul.mubr.msk.f32.vlgmr.msra.gmra.mrb[32].mxu1 %vm64_vm3, %v3660_v18 }
0x140b   :  { %3418 = vmatprep.mubr.msk.f32.mxu1 %vm3687_vm0, %v3686_v2  ;;  %v996_v42 = vpop.permute.xlu0 %995 }
0x14d9   :  { %v3401_v19 = vpop.f32.mrb[30].mxu1 }
0x14da   :  { %v2377_v9 = vpop.f32.mrb[31].mxu1 }
0x14dd   :  { %v3406_v10 = vpop.f32.mrb[32].mxu1 }
0x14de   :  { %vm2467_vm11 = vcmp.lt.f32.partialorder %v3401_v19, %v3406_v10  ;;  %v2457_v33 = vpop.f32.mrb[33].mxu1 }
0x14df   :  { %vm2469_vm12 = vmand %vm1828_vm14, %vm2467_vm11  ;;  %vm2466_vm6 = vcmp.lt.f32.partialorder %v2377_v9, %v2457_v33 }
0x14e0   :  { %v3045_v34 = vsel %vm2469_vm12, 1.0, %v3686_v2  ;;  %vm2468_vm7 = vmand %vm1827_vm15, %vm2466_vm6 }
0x14e1   :  { %v3044_v46 = vsel %vm2468_vm7, 1.0, %v3686_v2  ;;  %vm3535_vm3 = vmpackc.low %vm2469_vm12, %vm2468_vm7  ;;  %vm2649_vm10 = vcmp.gt.f32.partialorder %v3045_v34, 0.0  ;;  %vm4436_vm7 = vcmask 261120  }
0x14e2   :  { %v3619_v47 = vpack.i.bf16 %v3045_v34, %v3044_v46  ;;  %3536 = vmatpush3.bf16.msk.msra.mxu0 %vm3535_vm3, %v3691_v16  ;;  %v1829_v16 = vsel %vm1827_vm15, 1, %v3690_v20  ;;  %vm2648_vm8 = vcmp.gt.f32.partialorder %v3044_v46, 0.0  ;;  %v2651_v7 = vsel %vm2649_vm10, 1, %v3690_v20  ;;  %vm4437_vm4 = vmmov %vm4436_vm7 }
0x14e3   :  { %3540 = vmatprep.subr.bf16.mxu0 %v3692_v21  ;;  %v2650_v23 = vsel %vm2648_vm8, 1, %v3690_v20  ;;  %vm4438_vm5 = vmmov %vm4437_vm4 }
0x14e4   :  { %3620 = vperm.xlu1 %3572, %v3619_v47   ;;  %vm4440_vm9 = vmmov %vm4437_vm4 }
0x14e5   :  { %3412 = vmatmul.mubr.msk.f32.vlgmr.msra.gmra.mrb[34].mxu0 %vm158_vm1, %v3661_v3  ;;  %vm4441_vm10 = vmmov %vm4437_vm4 }
0x14e6   :  { %3437 = vmatprep.mubr.msk.f32.mxu0 %vm3687_vm0, %v3686_v2  ;;  %3542 = vmatpush3.bf16.msra.mxu0 %v3541_v56 }
0x14e7   :  { %3543 = vmatprep.subr.bf16.mxu0 %v3692_v21 }
0x14e8   :  { %1822 = vperm.xlu1 %3572, %v1819_v12  }
0x14ec   :  { %1005 = vperm.xlu1 %3572, %v1002_v14  }
0x14f0   :  { %1832 = vperm.xlu1 %3572, %v1829_v16  }
0x14f4   :  { %2653 = vperm.xlu1 %3572, %v2650_v23  }
0x14f8   :  { %1031 = vperm.xlu1 %3572, %v1029_v24  }
0x1563   :  { %v3621_v4 = vpop.permute.xlu1 %3620 }
0x1564   :  { %v3623_v27 = vunpack.i.h.bf16 %v3621_v4  ;;  %v3622_v28 = vunpack.i.l.bf16 %v3621_v4 }
0x1566   :  { %v4289_v29 = vmul.f32 %v3623_v27, %v2487_v32  ;;  %v4291_v31 = vmul.f32 %v3622_v28, %v2486_v52 }
0x1567   :  { %v1823_v57 = vpop.permute.xlu1 %1822 }
0x1568   :  { %v3538_v37 = vpack.c.bf16 %v4289_v29, %v4291_v31  ;;  %3649 = vrcp.f32 %v1823_v57 }
0x1569   :  { %3651 = vrcp.f32 %v996_v42 }
0x156a   :  { %3539 = vmatpush3.bf16.msra.mxu1 %v3538_v37 }
0x156b   :  { %3552 = vmatprep.subr.bf16.mxu1 %v3692_v21  ;;  %v1006_v19 = vpop.permute.xlu1 %1005 }
0x156c   :  { %vm1010_vm6 = vcmp.eq.s32.totalorder %v1006_v19, 1 }
0x156d   :  { %3419 = vmatmul.mubr.msk.f32.vlgmr.msra.gmra.mrb[34].mxu1 %vm158_vm1, %v3661_v3  ;;  %v1012_v14 = vsel %vm1010_vm6, %v3955_v63, -1e+30 }
0x156e   :  { %3448 = vmatprep.mubr.msk.f32.mxu1 %vm3687_vm0, %v3686_v2  ;;  %3554 = vmatpush3.bf16.msra.mxu1 %v3553_v17 }
0x156f   :  { %3555 = vmatprep.subr.bf16.mxu1 %v3692_v21  ;;  %v1833_v10 = vpop.permute.xlu1 %1832 }
0x1570   :  { %vm1837_vm11 = vcmp.eq.s32.totalorder %v1833_v10, 1 }
0x1571   :  { %v1839_v46 = vsel %vm1837_vm11, %v4131_v55, -1e+30 }
0x1572   :  { %v3650_v36 = vpop.eup %3649  ;;  %v1841_v16 = vsel %vm4437_vm4, %v1839_v46, -inf }
0x1573   :  { %v1826_v43 = vmul.f32 %v3650_v36, %v4183_v35  ;;  %v3652_v35 = vpop.eup %3651  ;;  %v2654_v47 = vpop.permute.xlu1 %2653  ;;  %v1842_v26 = vrot.slane %v1841_v16, 4 }
0x1574   :  { %v999_v51 = vmul.f32 %v3652_v35, %v4007_v53  ;;  %vm2658_vm8 = vcmp.eq.s32.totalorder %v2654_v47, 1 }
0x1575   :  { %v2660_v55 = vsel %vm2658_vm8, %v4291_v31, -1e+30  ;;  %v1843_v27 = vmax.f32 %v1841_v16, %v1842_v26 }
0x1576   :  { %v2662_v63 = vsel %vm4441_vm10, %v2660_v55, -inf  ;;  %v2863_v55 = vld [vmem:[%s4416_s12] sm:$0xff] }
0x15b8   :  { %v2566_v1 = vpop.f32.mrb[34].mxu0 }
0x15b9   :  { %v2640_v59 = vmax.f32 %v2566_v1, 1.0  ;;  %vm2676_vm15 = vcmp.gt.f32.partialorder %v2566_v1, 0.0  ;;  %v3413_v0 = vpop.f32.mrb[35].mxu0  ;;  %v2663_v1 = vrot.slane %v2662_v63, 4 }
0x15ba   :  { %v2677_v39 = vsel %vm2676_vm15, 1, %v3690_v20  ;;  %v2696_v20 = vld [vmem:[%s4414_s10 + $0x18] sm:$0xff]  ;;  %vm4439_vm15 = vmmov %vm4437_vm4  ;;  %v1844_v0 = vrot.slane %v1843_v27, 2 }
0x15bb   :  { %2643 = vperm.xlu0 %3573, %v2640_v59   ;;  %2679 = vperm.xlu1 %3572, %v2677_v39   ;;  %v3544_v53 = vpack.c.bf16 %v2696_v20, %v2695_v41  ;;  %v1014_v25 = vsel %vm4439_vm15, %v1012_v14, -inf  ;;  %v2664_v42 = vmax.f32 %v2662_v63, %v2663_v1  ;;  %v1032_v41 = vpop.permute.xlu1 %1031  ;;  %v2783_v14 = vld [vmem:[%s4415_s11 + $0x18] sm:$0xff] }
0x15bc   :  { %v1015_v52 = vrot.slane %v1014_v25, 4  ;;  %v1845_v31 = vmax.f32 %v1843_v27, %v1844_v0  ;;  %vm1033_vm11 = vcmp.eq.s32.totalorder %v1032_v41, 1 }
0x15bd   :  { %3545 = vmatpush3.bf16.msra.mxu0 %v3544_v53  ;;  %v2665_v35 = vrot.slane %v2664_v42, 2 }
0x15be   :  { %3546 = vmatprep.subr.bf16.mxu0 %v3692_v21  ;;  %v1016_v57 = vmax.f32 %v1014_v25, %v1015_v52 }
0x15bf   :  { %1008 = vperm.xlu0 %3573, %v1003_v44   ;;  %1867 = vrot.lane.b32.xlu1 %v1826_v43, %s3693_s27  ;;  %v2666_v20 = vmax.f32 %v2664_v42, %v2665_v35 }
0x15c0   :  { %v1017_v39 = vrot.slane %v1016_v57, 2 }
0x15c1   :  { %3548 = vmatpush3.bf16.msra.mxu0 %v3547_v15 }
0x15c2   :  { %3549 = vmatprep.subr.bf16.mxu0 %v3692_v21 }
0x15c3   :  { %1835 = vperm.xlu0 %3573, %v1830_v45  }
0x15c5   :  { %3551 = vmatpush3.bf16.msra.mxu0 %v3550_v48  ;;  %v2667_v48 = vrot.slane %v2666_v20, 1 }
0x15c7   :  { %2656 = vperm.xlu0 %3573, %v2651_v7   ;;  %v1018_v7 = vmax.f32 %v1016_v57, %v1017_v39 }
0x15c9   :  { %v1019_v56 = vrot.slane %v1018_v7, 1 }
0x15cb   :  { %1858 = vperm.xlu0 %3573, %v1856_v30  }
0x15cf   :  { %1041 = vrot.lane.b32.xlu0 %v999_v51, %s3693_s27  ;;  %v1846_v51 = vrot.slane %v1845_v31, 1 }
0x15d1   :  { %v1847_v15 = vmax.f32 %v1845_v31, %v1846_v51 }
0x163a   :  { %v2644_v61 = vpop.permute.xlu0 %2643  ;;  %v2680_v58 = vpop.permute.xlu1 %2679 }
0x163b   :  { %3653 = vrcp.f32 %v2644_v61  ;;  %v1020_v61 = vmax.f32 %v1018_v7, %v1019_v56  ;;  %vm2681_vm6 = vcmp.eq.s32.totalorder %v2680_v58, 1 }
0x163e   :  { %v1009_v18 = vpop.permute.xlu0 %1008 }
0x163f   :  { %vm1011_vm12 = vcmp.eq.s32.totalorder %v1009_v18, 1 }
0x1640   :  { %v2636_v22 = vpop.f32.mrb[34].mxu1  ;;  %v1013_v3 = vsel %vm1011_vm12, %v3953_v62, -1e+30  ;;  %vm4442_vm12 = vmmov %vm4437_vm4 }
0x1641   :  { %v3420_v38 = vpop.f32.mrb[35].mxu1  ;;  %v1021_v23 = vsel %vm4438_vm5, %v1013_v3, -inf }
0x1642   :  { %v1836_v9 = vpop.permute.xlu0 %1835  ;;  %v1022_v4 = vrot.slane %v1021_v23, 4  ;;  %v2668_v38 = vmax.f32 %v2666_v20, %v2667_v48 }
0x1643   :  { %vm1838_vm14 = vcmp.eq.s32.totalorder %v1836_v9, 1 }
0x1644   :  { %v1840_v33 = vsel %vm1838_vm14, %v4129_v54, -1e+30  ;;  %v1023_v28 = vmax.f32 %v1021_v23, %v1022_v4  ;;  %v3050_v23 = vld [vmem:[%s4414_s10 + $0x40] ss:$0 sm:$0xff] }
0x1645   :  { %v3654_v40 = vpop.eup %3653  ;;  %v1848_v12 = vsel %vm4436_vm7, %v1840_v33, -inf  ;;  %vm4443_vm7 = vmmov %vm4437_vm4 }
0x1646   :  { %v2647_v8 = vmul.f32 %v3654_v40, %v2636_v22  ;;  %v2657_v34 = vpop.permute.xlu0 %2656  ;;  %v1849_v24 = vrot.slane %v1848_v12, 4  ;;  %v1868_v40 = vpop.permute.xlu1 %1867 }
0x1647   :  { %vm2659_vm3 = vcmp.eq.s32.totalorder %v2657_v34, 1 }
0x1648   :  { %2688 = vrot.lane.b32.xlu0 %v2647_v8, %s3693_s27  ;;  %v2661_v54 = vsel %vm2659_vm3, %v4289_v29, -1e+30  ;;  %v1850_v32 = vmax.f32 %v1848_v12, %v1849_v24  ;;  %v1024_v29 = vrot.slane %v1023_v28, 2  ;;  %vm4444_vm3 = vmmov %vm4437_vm4  ;;  %vm4445_vm4 = vcmask 523264   ;;  %v2782_v12 = vld [vmem:[%s4415_s11 + $0x10] sm:$0xff] }
0x1649   :  { %v2669_v62 = vsel %vm4440_vm9, %v2661_v54, -inf  ;;  %v3556_v16 = vpack.c.bf16 %v2783_v14, %v2782_v12  ;;  %vm4446_vm8 = vmmov %vm4444_vm3 }
0x164a   :  { %v2670_v37 = vrot.slane %v2669_v62, 4  ;;  %v1851_v59 = vrot.slane %v1850_v32, 2  ;;  %v1025_v44 = vmax.f32 %v1023_v28, %v1024_v29  ;;  %v1859_v50 = vpop.permute.xlu0 %1858 }
0x164b   :  { %vm1860_vm14 = vcmp.eq.s32.totalorder %v1859_v50, 1  ;;  %3557 = vmatpush3.bf16.msra.mxu1 %v3556_v16 }
0x164c   :  { %v2671_v36 = vmax.f32 %v2669_v62, %v2670_v37  ;;  %v1852_v43 = vmax.f32 %v1850_v32, %v1851_v59  ;;  %v1026_v6 = vrot.slane %v1025_v44, 1  ;;  %3558 = vmatprep.subr.bf16.mxu1 %v3692_v21  ;;  %v2864_v21 = vld [vmem:[%s4416_s12 + $0x8] sm:$0xff]  ;;  %v3052_v62 = vld [vmem:[%s4415_s11 + $0x20] ss:$0 sm:$0xff]  ;;  %s3696_s11 = smov [#allocation2]  }
0x164d   :  { %v3559_v4 = vpack.c.bf16 %v2864_v21, %v2863_v55  ;;  %s2962_s19 = sshll.u32 %s3696_s11, 4  ;;  %s2963_s19 = int_to_ptr.vmem [resolvable:$true] %s2962_s19 }
0x164e   :  { %v2672_v45 = vrot.slane %v2671_v36, 2  ;;  %v1853_v30 = vrot.slane %v1852_v43, 1  ;;  %v1027_v5 = vmax.f32 %v1025_v44, %v1026_v6  ;;  %v1042_v8 = vpop.permute.xlu0 %1041  ;;  %p3667_p1 = scmp.lt.s32.totalorder %s2963_s19, %s2963_s19 }
0x1650   :  { %v2673_v49 = vmax.f32 %v2671_v36, %v2672_v45  ;;  %v1854_v53 = vmax.f32 %v1852_v43, %v1853_v30  ;;  %v1037_v17 = vsel %vm1036_vm13, %v1027_v5, %v1020_v61 }
0x1651   :  { %v1039_v18 = vsel %vm1033_vm11, %v1037_v17, 0.0 }
0x1652   :  { %v2674_v11 = vrot.slane %v2673_v49, 1  ;;  %v1863_v60 = vsel %vm1036_vm13, %v1854_v53, %v1847_v15  ;;  %v1044_v10 = vsel %vm4443_vm7, %v1039_v18, %v1042_v8 }
0x1653   :  { %v1865_v22 = vsel %vm1860_vm14, %v1863_v60, 0.0 }
0x1654   :  { %v2675_v13 = vmax.f32 %v2673_v49, %v2674_v11  ;;  %v1870_v19 = vsel %vm4442_vm12, %v1865_v22, %v1868_v40 }
0x1655   :  { %v1871_v33 = vadd.f32 %v1870_v19, %v1044_v10 }
0x1656   :  { %v2684_v9 = vsel %vm1036_vm13, %v2675_v13, %v2668_v38 }
0x1657   :  { %v2686_v46 = vsel %vm2681_vm6, %v2684_v9, 0.0 }
0x16ba   :  { %v2689_v34 = vpop.permute.xlu0 %2688 }
0x16bb   :  { %v2691_v47 = vsel %vm4444_vm3, %v2686_v46, %v2689_v34 }
0x16bc   :  { %v2692_v3 = vadd.f32 %v2691_v47, %v1871_v33 }
0x16be   :  { %3438 = vmatmul.mubr.msk.f32.vlgmr.msra.gmra.mrb[52].mxu0 %vm4445_vm4, %v2692_v3 }
0x1791   :  { %v2775_v24 = vpop.f32.mrb[52].mxu0 }
0x1792   :  { %v2776_v54 = vadd.f32 %v3050_v23, %v2775_v24  ;;  %v3439_v25 = vpop.f32.mrb[53].mxu0 }
0x1794   :  { %v2779_v26 = vmax.f32 %v2776_v54, 0.0 }
0x1796   :  { %3449 = vmatmul.mubr.msk.f32.vlgmr.msra.gmra.mrb[36].mxu1 %vm4446_vm8, %v2779_v26 }
0x1797   :  { %3455 = vmatprep.mubr.msk.f32.mxu1 %vm3687_vm0, %v3686_v2  ;;  %3560 = vmatpush3.bf16.msra.mxu1 %v3559_v4  ;;  %v3054_v2 = vld [vmem:[%s4416_s12 + $0x10] ss:$0 sm:$0xff]  ;;  %s3662_s12 = scalar_lea.vmem %s2963_s19, 32 }
0x1798   :  { %p3663_p0 = scmp.ne.s32.totalorder %s2963_s19, %s3662_s12  ;;  %p3668_p2 = scmp.lt.s32.totalorder %s3662_s12, %s3662_s12 }
0x179a   :  { %p3669_p3 = por %p3668_p2, %p3667_p1 }
0x179c   :  { %p3670_p4 = pnand %p3669_p3, %p3663_p0 }
0x1869   :  { %v2858_v52 = vpop.f32.mrb[36].mxu1 }
0x186a   :  { %v2859_v32 = vadd.f32 %v3052_v62, %v2858_v52  ;;  %v3450_v63 = vpop.f32.mrb[37].mxu1 }
0x186c   :  { %v2862_v27 = vmax.f32 %v2859_v32, 0.0 }
0x186e   :  { %3456 = vmatmul.mubr.msk.f32.vlgmr.msra.gmra.mrb[38].mxu1 %vm158_vm1, %v2862_v27 }
0x1941   :  { %v2939_v28 = vpop.f32.mrb[38].mxu1 }
0x1942   :  { %v2940_v37 = vadd.f32 %v3054_v2, %v2939_v28  ;;  %v3457_v57 = vpop.f32.mrb[39].mxu1 }
0x1944   :  { %v2943_v1 = vsel %vm71_vm2, %v2940_v37, -inf }
0x1945   :  { %2944 = vmax.xlane.f32.xlu1 %v2943_v1 }
0x19d2   :  { %v2945_v59 = vpop.xlane.xlu1 %2944 }
0x19d3   :  { %v2946_v0 = vsub.f32 %v2940_v37, %v2945_v59 }
0x19d5   :  { %v2947_v29 = vmul.f32 1.442695, %v2946_v0 }
0x19d7   :  { %3655 = vpow2.f32 %v2947_v29 }
0x19e1   :  { %v3656_v36 = vpop.eup %3655 }
0x19e2   :  { %v2949_v39 = vsel %vm71_vm2, %v3656_v36, 0.0 }
0x19e3   :  { %2950 = vadd.xlane.f32.xlu0 %v2949_v39 }
0x1a70   :  { %v2951_v42 = vpop.xlane.xlu0 %2950 }
0x1a71   :  { %3657 = vlog2.f32 %v2951_v42 }
0x1a7b   :  { %v3658_v43 = vpop.eup %3657 }
0x1a7c   :  { %v2953_v31 = vmul.f32 0.6931472, %v3658_v43 }
0x1a7e   :  { %v2954_v44 = vsub.f32 %v2946_v0, %v2953_v31 }
0x1a80   :  { %2955 = vst [vmem:[#allocation2] sm:$0x3] %v2954_v44 }
0x1a81   :  { %3673 = shalt.err (!%p3670_p4)
}
0x1a82   :  { %s3674_s21 = scalar_lea.hbm %s4417_s13, 32 }
0x1a83   :  { %p3675_p5 = scmp.ne.s32.totalorder %s4417_s13, %s3674_s21  ;;  %p3678_p6 = scmp.lt.u32.totalorder %s3674_s21, %s4417_s13 }
0x1a85   :  { %p3680_p7 = pnand %p3678_p6, %p3675_p5 }
0x1a87   :  { %3683 = shalt.err (!%p3680_p7)
}
0x1a88   :  { %2965 = dma.vmem_to_hbm [thread:$0]  %s2963_s19, 32, %s4417_s13, [#allocation3]  }
0x1a89   :  { %3684 = dma.done.wait [#allocation3], 32  }
0x1a8a   :  { %3685 = vsyncadd [#allocation3], 4294967264 }
0x1a8b   :  { %2969 = vsyncpa [#allocation3], 1 }

</bundles_post_ra>
